<compile_context>
chip_gen: v5e
topology: v5e:2x2
jax: 0.10.0
libtpu: 0.0.40
codegen_flags: <defaults>
</compile_context>

<pallas_src>
import jax
import jax.numpy as jnp
from jax.experimental import pallas as pl
from jax.experimental.pallas import tpu as pltpu

# ------------------------- model configuration (small) -------------------------
VOCAB = 100        # synthetic vocab
MAX_POS = 16       # max position embeddings
TYPES = 2          # token type embeddings
H = 64             # hidden size (embedding_dim)
NH = 2             # attention heads
DH = H // NH       # head dim
FF = 128           # feed-forward intermediate size
LAYERS = 2         # encoder layers
NUM_CLASSES = 4
LOGIT_PAD = 128    # lane-dense classifier output width (slice to NUM_CLASSES outside)
DROPOUT_P = 0.5    # eval mode -> identity
B, S = 2, 8        # batch, sequence length

_N_INPUTS = 20     # number of arrays handed to the fused kernel


# ------------------------------ fused Pallas kernel -----------------------------
def _fused_bert_kernel(
    emb_ref, mask_bias_ref, emb_ln_g_ref, emb_ln_b_ref,
    wqkv_ref, bqkv_ref, wo_ref, bo_ref, ln1_g_ref, ln1_b_ref,
    w1_ref, b1_ref, w2_ref, b2_ref, ln2_g_ref, ln2_b_ref,
    pool_w_ref, pool_b_ref, fc1_w_ref, fc1_b_ref,
    logits_ref,            # output: [B, LOGIT_PAD]
    ctx_ref,               # VMEM scratch: [B*S, H] attention context
):
    def layer_norm(x, g, b):
        mu = jnp.mean(x, axis=-1, keepdims=True)
        var = jnp.mean((x - mu) * (x - mu), axis=-1, keepdims=True)
        return (x - mu) * jax.lax.rsqrt(var + 1e-12) * g + b

    mask_bias = mask_bias_ref[...]                 # [B, S] additive mask (0 / -1e9)
    scale = 1.0 / float(DH) ** 0.5

    # Embedding LayerNorm; activations stay VMEM/vreg-resident from here on.
    h = layer_norm(emb_ref[...], emb_ln_g_ref[...], emb_ln_b_ref[...])   # [B*S, H]

    for l in range(LAYERS):                        # static unroll (LAYERS=2)
        # ---- fused QKV projection: single [B*S, H] @ [H, 3H] matmul ----
        qkv = jnp.dot(h, wqkv_ref[l], preferred_element_type=jnp.float32) + bqkv_ref[l]

        # ---- attention: per (batch, head) on static lane slices of qkv ----
        for b in range(B):
            r0 = b * S
            bias = mask_bias[b:b + 1, :]           # [1, S]
            for hh in range(NH):
                c0 = hh * DH
                q = qkv[r0:r0 + S, c0:c0 + DH]                     # [S, DH]
                k = qkv[r0:r0 + S, H + c0:H + c0 + DH]             # [S, DH]
                v = qkv[r0:r0 + S, 2 * H + c0:2 * H + c0 + DH]     # [S, DH]
                # scores = q @ k^T (contract last dims; no explicit transpose)
                s = jax.lax.dot_general(
                    q, k, (((1,), (1,)), ((), ())),
                    preferred_element_type=jnp.float32) * scale    # [S, S]
                s = s + bias
                s = s - jnp.max(s, axis=-1, keepdims=True)
                p = jnp.exp(s)
                p = p * pl.reciprocal(jnp.sum(p, axis=-1, keepdims=True), approx=True)
                ctx_ref[r0:r0 + S, c0:c0 + DH] = jnp.dot(
                    p, v, preferred_element_type=jnp.float32)      # [S, DH]

        attn_out = jnp.dot(ctx_ref[...], wo_ref[l],
                           preferred_element_type=jnp.float32) + bo_ref[l]
        h = layer_norm(h + attn_out, ln1_g_ref[l], ln1_b_ref[l])

        ff = jnp.dot(h, w1_ref[l], preferred_element_type=jnp.float32) + b1_ref[l]
        # TODO(synk): HF BERT default is exact (erf) GELU; tanh-approx kept for the EUP path.
        ff = jax.nn.gelu(ff, approximate=True)
        ff = jnp.dot(ff, w2_ref[l], preferred_element_type=jnp.float32) + b2_ref[l]
        h = layer_norm(h + ff, ln2_g_ref[l], ln2_b_ref[l])

    # ---- BERT pooler (tanh on [CLS]) + dropout (eval: identity) + classifier ----
    # TODO(synk): training-mode stochastic dropout (p=0.5) not applied (predict()/eval() parity).
    for b in range(B):
        cls = h[b * S:b * S + 1, :]                                # [1, H]
        pooled = jnp.tanh(jnp.dot(cls, pool_w_ref[...],
                                  preferred_element_type=jnp.float32) + pool_b_ref[...])
        logits_ref[b:b + 1, :] = jnp.dot(
            pooled, fc1_w_ref[...],
            preferred_element_type=jnp.float32) + fc1_b_ref[...]   # [1, LOGIT_PAD]


# ------------------------------ parameter init ----------------------------------
def init_params(key):
    ks = iter(jax.random.split(key, 64))

    def nrm(shape, scale=0.02):
        return jax.random.normal(next(ks), shape, jnp.float32) * scale

    params = {
        "word_emb": nrm((VOCAB, H)),
        "pos_emb": nrm((MAX_POS, H)),
        "type_emb": nrm((TYPES, H)),
        # LN / bias params stored 2-D so no per-call reshapes are needed.
        "emb_ln_g": jnp.ones((1, H), jnp.float32),
        "emb_ln_b": jnp.zeros((1, H), jnp.float32),
        # Per-layer weights stacked on a leading LAYERS axis (single DMA each).
        "wqkv": nrm((LAYERS, H, 3 * H)),                  # fused Q|K|V
        "bqkv": jnp.zeros((LAYERS, 1, 3 * H), jnp.float32),
        "wo": nrm((LAYERS, H, H)),
        "bo": jnp.zeros((LAYERS, 1, H), jnp.float32),
        "ln1_g": jnp.ones((LAYERS, 1, H), jnp.float32),
        "ln1_b": jnp.zeros((LAYERS, 1, H), jnp.float32),
        "w1": nrm((LAYERS, H, FF)),
        "b1": jnp.zeros((LAYERS, 1, FF), jnp.float32),
        "w2": nrm((LAYERS, FF, H)),
        "b2": jnp.zeros((LAYERS, 1, H), jnp.float32),
        "ln2_g": jnp.ones((LAYERS, 1, H), jnp.float32),
        "ln2_b": jnp.zeros((LAYERS, 1, H), jnp.float32),
        "pool_w": nrm((H, H)),
        "pool_b": jnp.zeros((1, H), jnp.float32),
        # Classifier lane-padded to 128 for a lane-dense output store.
        "fc1_w_pad": jnp.pad(nrm((H, NUM_CLASSES)),
                             ((0, 0), (0, LOGIT_PAD - NUM_CLASSES))),
        "fc1_b_pad": jnp.zeros((1, LOGIT_PAD), jnp.float32),
    }
    return params


# -------------------------------- forward pass -----------------------------------
@jax.jit
def finetuned_llm_forward(params, ids, masks):
    """FinetunedLLM.forward (eval): logits = fc1(dropout(BERT(ids, masks).pooled))."""
    # Embedding gather/sum is JAX glue (token_type fixed to 0, positions 0..S-1).
    emb = (jnp.take(params["word_emb"], ids, axis=0)
           + params["pos_emb"][:S][None, :, :]
           + params["type_emb"][0][None, None, :]).reshape(B * S, H)
    mask_bias = (1.0 - masks.astype(jnp.float32)) * jnp.float32(-1e9)   # [B, S]

    vmem = pl.BlockSpec(memory_space=pltpu.MemorySpace.VMEM)
    logits_pad = pl.pallas_call(
        _fused_bert_kernel,
        out_shape=jax.ShapeDtypeStruct((B, LOGIT_PAD), jnp.float32),
        in_specs=[vmem] * _N_INPUTS,
        out_specs=vmem,
        scratch_shapes=[pltpu.VMEM((B * S, H), jnp.float32)],
    )(
        emb, mask_bias,
        params["emb_ln_g"], params["emb_ln_b"],
        params["wqkv"], params["bqkv"], params["wo"], params["bo"],
        params["ln1_g"], params["ln1_b"],
        params["w1"], params["b1"], params["w2"], params["b2"],
        params["ln2_g"], params["ln2_b"],
        params["pool_w"], params["pool_b"],
        params["fc1_w_pad"], params["fc1_b_pad"],
    )
    return logits_pad[:, :NUM_CLASSES]


# ---------------------------- pure-JAX reference ----------------------------------
def reference_forward(params, ids, masks):
    maskf = masks.astype(jnp.float32)
    emb = (jnp.take(params["word_emb"], ids, axis=0)
           + params["pos_emb"][:S][None, :, :]
           + params["type_emb"][0][None, None, :]).reshape(B * S, H)

    def ln(x, g, b):
        mu = jnp.mean(x, -1, keepdims=True)
        var = jnp.mean((x - mu) ** 2, -1, keepdims=True)
        return (x - mu) * jax.lax.rsqrt(var + 1e-12) * g + b

    h = ln(emb, params["emb_ln_g"], params["emb_ln_b"])
    bias = ((1.0 - maskf) * -1e9)[:, None, None, :]                 # [B,1,1,S]
    for l in range(LAYERS):
        qkv = h @ params["wqkv"][l] + params["bqkv"][l]
        q, k, v = jnp.split(qkv, 3, axis=-1)

        def heads(x):
            return x.reshape(B, S, NH, DH).transpose(0, 2, 1, 3)

        s = jnp.einsum("bhqd,bhkd->bhqk", heads(q), heads(k)) / jnp.sqrt(jnp.float32(DH))
        p = jax.nn.softmax(s + bias, axis=-1)
        ctx = jnp.einsum("bhqk,bhkd->bhqd", p, heads(v)).transpose(0, 2, 1, 3).reshape(B * S, H)
        h = ln(h + ctx @ params["wo"][l] + params["bo"][l],
               params["ln1_g"][l], params["ln1_b"][l])
        ff = jax.nn.gelu(h @ params["w1"][l] + params["b1"][l], approximate=True)
        h = ln(h + ff @ params["w2"][l] + params["b2"][l],
               params["ln2_g"][l], params["ln2_b"][l])
    cls = h.reshape(B, S, H)[:, 0, :]
    pooled = jnp.tanh(cls @ params["pool_w"] + params["pool_b"])
    return (pooled @ params["fc1_w_pad"] + params["fc1_b_pad"])[:, :NUM_CLASSES]


# ------------------------------------ main ----------------------------------------
if __name__ == "__main__":
    key = jax.random.PRNGKey(0)
    k_ids, k_params = jax.random.split(key)

    ids = jax.random.randint(k_ids, (B, S), 0, VOCAB, dtype=jnp.int32)
    masks = jnp.ones((B, S), dtype=jnp.int32).at[1, 6:].set(0)   # ragged second example

    params = init_params(k_params)

    logits = finetuned_llm_forward(params, ids, masks)
    jax.block_until_ready(logits)

    assert logits.shape == (B, NUM_CLASSES)
    assert bool(jnp.all(jnp.isfinite(logits)))

    ref = reference_forward(params, ids, masks)
    assert bool(jnp.allclose(logits, ref, rtol=1e-2, atol=1e-2))

    print("KERNEL_OK")
</pallas_src>

<mosaic_0001>
module attributes {stable_mosaic.version = 11 : i64} {
  func.func @_fused_bert_kernel(%arg0: memref<16x64xf32, #tpu.memory_space<vmem>>, %arg1: memref<2x8xf32, #tpu.memory_space<vmem>>, %arg2: memref<1x64xf32, #tpu.memory_space<vmem>>, %arg3: memref<1x64xf32, #tpu.memory_space<vmem>>, %arg4: memref<2x64x192xf32, #tpu.memory_space<vmem>>, %arg5: memref<2x1x192xf32, #tpu.memory_space<vmem>>, %arg6: memref<2x64x64xf32, #tpu.memory_space<vmem>>, %arg7: memref<2x1x64xf32, #tpu.memory_space<vmem>>, %arg8: memref<2x1x64xf32, #tpu.memory_space<vmem>>, %arg9: memref<2x1x64xf32, #tpu.memory_space<vmem>>, %arg10: memref<2x64x128xf32, #tpu.memory_space<vmem>>, %arg11: memref<2x1x128xf32, #tpu.memory_space<vmem>>, %arg12: memref<2x128x64xf32, #tpu.memory_space<vmem>>, %arg13: memref<2x1x64xf32, #tpu.memory_space<vmem>>, %arg14: memref<2x1x64xf32, #tpu.memory_space<vmem>>, %arg15: memref<2x1x64xf32, #tpu.memory_space<vmem>>, %arg16: memref<64x64xf32, #tpu.memory_space<vmem>>, %arg17: memref<1x64xf32, #tpu.memory_space<vmem>>, %arg18: memref<64x128xf32, #tpu.memory_space<vmem>>, %arg19: memref<1x128xf32, #tpu.memory_space<vmem>>, %arg20: memref<2x128xf32, #tpu.memory_space<vmem>>, %arg21: memref<16x64xf32, #tpu.memory_space<vmem>>) attributes {dimension_semantics = [], scalar_prefetch = 0 : i64, scratch_operands = 1 : i64, tpu.core_type = #tpu.core_type<tc>} {
    %c0 = arith.constant 0 : index
    %c0_0 = arith.constant 0 : index
    %0 = vector.load %arg1[%c0, %c0_0] : memref<2x8xf32, #tpu.memory_space<vmem>>, vector<2x8xf32>
    %c0_1 = arith.constant 0 : index
    %c0_2 = arith.constant 0 : index
    %1 = vector.load %arg0[%c0_1, %c0_2] : memref<16x64xf32, #tpu.memory_space<vmem>>, vector<16x64xf32>
    %c0_3 = arith.constant 0 : index
    %c0_4 = arith.constant 0 : index
    %2 = vector.load %arg2[%c0_3, %c0_4] : memref<1x64xf32, #tpu.memory_space<vmem>>, vector<1x64xf32>
    %c0_5 = arith.constant 0 : index
    %c0_6 = arith.constant 0 : index
    %3 = vector.load %arg3[%c0_5, %c0_6] : memref<1x64xf32, #tpu.memory_space<vmem>>, vector<1x64xf32>
    %cst = arith.constant dense<0.000000e+00> : vector<16xf32>
    %4 = vector.multi_reduction <add>, %1, %cst [1] : vector<16x64xf32> to vector<16xf32>
    %5 = vector.shape_cast %4 : vector<16xf32> to vector<16x1xf32>
    %cst_7 = arith.constant 6.400000e+01 : f32
    %6 = vector.broadcast %cst_7 : f32 to vector<16x1xf32>
    %7 = arith.divf %5, %6 : vector<16x1xf32>
    %8 = vector.broadcast %7 : vector<16x1xf32> to vector<16x64xf32>
    %9 = arith.subf %1, %8 : vector<16x64xf32>
    %10 = vector.broadcast %7 : vector<16x1xf32> to vector<16x64xf32>
    %11 = arith.subf %1, %10 : vector<16x64xf32>
    %12 = arith.mulf %9, %11 : vector<16x64xf32>
    %cst_8 = arith.constant dense<0.000000e+00> : vector<16xf32>
    %13 = vector.multi_reduction <add>, %12, %cst_8 [1] : vector<16x64xf32> to vector<16xf32>
    %14 = vector.shape_cast %13 : vector<16xf32> to vector<16x1xf32>
    %cst_9 = arith.constant 6.400000e+01 : f32
    %15 = vector.broadcast %cst_9 : f32 to vector<16x1xf32>
    %16 = arith.divf %14, %15 : vector<16x1xf32>
    %17 = vector.broadcast %7 : vector<16x1xf32> to vector<16x64xf32>
    %18 = arith.subf %1, %17 : vector<16x64xf32>
    %cst_10 = arith.constant 9.99999996E-13 : f32
    %19 = vector.broadcast %cst_10 : f32 to vector<16x1xf32>
    %20 = arith.addf %16, %19 : vector<16x1xf32>
    %21 = math.rsqrt %20 : vector<16x1xf32>
    %22 = vector.broadcast %21 : vector<16x1xf32> to vector<16x64xf32>
    %23 = arith.mulf %18, %22 : vector<16x64xf32>
    %24 = vector.broadcast %2 : vector<1x64xf32> to vector<16x64xf32>
    %25 = arith.mulf %23, %24 : vector<16x64xf32>
    %26 = vector.broadcast %3 : vector<1x64xf32> to vector<16x64xf32>
    %27 = arith.addf %25, %26 : vector<16x64xf32>
    %c0_11 = arith.constant 0 : index
    %c0_12 = arith.constant 0 : index
    %c0_13 = arith.constant 0 : index
    %28 = vector.load %arg4[%c0_11, %c0_12, %c0_13] : memref<2x64x192xf32, #tpu.memory_space<vmem>>, vector<1x64x192xf32>
    %29 = vector.shape_cast %28 : vector<1x64x192xf32> to vector<64x192xf32>
    %cst_14 = arith.constant dense<0.000000e+00> : vector<16x192xf32>
    %30 = tpu.matmul %27, %29, %cst_14 {dimension_numbers = #tpu.dot_dimension_numbers<[1], [0], [0], [1], [0, 0, 1, 1], [], []>} : vector<16x64xf32>, vector<64x192xf32>, vector<16x192xf32> -> vector<16x192xf32>
    %c0_15 = arith.constant 0 : index
    %c0_16 = arith.constant 0 : index
    %c0_17 = arith.constant 0 : index
    %31 = vector.load %arg5[%c0_15, %c0_16, %c0_17] : memref<2x1x192xf32, #tpu.memory_space<vmem>>, vector<1x1x192xf32>
    %32 = vector.shape_cast %31 : vector<1x1x192xf32> to vector<1x192xf32>
    %33 = vector.broadcast %32 : vector<1x192xf32> to vector<16x192xf32>
    %34 = arith.addf %30, %33 : vector<16x192xf32>
    %35 = vector.extract_strided_slice %0 {offsets = [0, 0], sizes = [1, 8], strides = [1, 1]} : vector<2x8xf32> to vector<1x8xf32>
    %36 = vector.extract_strided_slice %34 {offsets = [0, 0], sizes = [8, 32], strides = [1, 1]} : vector<16x192xf32> to vector<8x32xf32>
    %37 = vector.extract_strided_slice %34 {offsets = [0, 64], sizes = [8, 32], strides = [1, 1]} : vector<16x192xf32> to vector<8x32xf32>
    %38 = vector.extract_strided_slice %34 {offsets = [0, 128], sizes = [8, 32], strides = [1, 1]} : vector<16x192xf32> to vector<8x32xf32>
    %cst_18 = arith.constant dense<0.000000e+00> : vector<8x8xf32>
    %39 = tpu.matmul %36, %37, %cst_18 {dimension_numbers = #tpu.dot_dimension_numbers<[1], [1], [0], [0], [0, 0, 1, 0], [], []>} : vector<8x32xf32>, vector<8x32xf32>, vector<8x8xf32> -> vector<8x8xf32>
    %cst_19 = arith.constant 0.176776692 : f32
    %40 = vector.broadcast %cst_19 : f32 to vector<8x8xf32>
    %41 = arith.mulf %39, %40 : vector<8x8xf32>
    %42 = vector.broadcast %35 : vector<1x8xf32> to vector<8x8xf32>
    %43 = arith.addf %41, %42 : vector<8x8xf32>
    %cst_20 = arith.constant dense<0xFF800000> : vector<8xf32>
    %44 = vector.multi_reduction <maximumf>, %43, %cst_20 [1] : vector<8x8xf32> to vector<8xf32>
    %45 = vector.shape_cast %44 : vector<8xf32> to vector<8x1xf32>
    %46 = vector.broadcast %45 : vector<8x1xf32> to vector<8x8xf32>
    %47 = arith.subf %43, %46 : vector<8x8xf32>
    %48 = math.exp %47 : vector<8x8xf32>
    %cst_21 = arith.constant dense<0.000000e+00> : vector<8xf32>
    %49 = vector.multi_reduction <add>, %48, %cst_21 [1] : vector<8x8xf32> to vector<8xf32>
    %50 = vector.shape_cast %49 : vector<8xf32> to vector<8x1xf32>
    %51 = tpu.reciprocal %50 {approx = true} : vector<8x1xf32> -> vector<8x1xf32>
    %52 = vector.broadcast %51 : vector<8x1xf32> to vector<8x8xf32>
    %53 = arith.mulf %48, %52 : vector<8x8xf32>
    %cst_22 = arith.constant dense<0.000000e+00> : vector<8x32xf32>
    %54 = tpu.matmul %53, %38, %cst_22 {dimension_numbers = #tpu.dot_dimension_numbers<[1], [0], [0], [1], [0, 0, 1, 1], [], []>} : vector<8x8xf32>, vector<8x32xf32>, vector<8x32xf32> -> vector<8x32xf32>
    %c0_23 = arith.constant 0 : index
    %c0_24 = arith.constant 0 : index
    %55 = vector.load %arg21[%c0_23, %c0_24] : memref<16x64xf32, #tpu.memory_space<vmem>>, vector<8x32xf32>
    tpu.vector_store %arg21[%c0_23, %c0_24], %54 {strides = array<i32>} : memref<16x64xf32, #tpu.memory_space<vmem>>, vector<8x32xf32>,
    %56 = vector.extract_strided_slice %34 {offsets = [0, 32], sizes = [8, 32], strides = [1, 1]} : vector<16x192xf32> to vector<8x32xf32>
    %57 = vector.extract_strided_slice %34 {offsets = [0, 96], sizes = [8, 32], strides = [1, 1]} : vector<16x192xf32> to vector<8x32xf32>
    %58 = vector.extract_strided_slice %34 {offsets = [0, 160], sizes = [8, 32], strides = [1, 1]} : vector<16x192xf32> to vector<8x32xf32>
    %cst_25 = arith.constant dense<0.000000e+00> : vector<8x8xf32>
    %59 = tpu.matmul %56, %57, %cst_25 {dimension_numbers = #tpu.dot_dimension_numbers<[1], [1], [0], [0], [0, 0, 1, 0], [], []>} : vector<8x32xf32>, vector<8x32xf32>, vector<8x8xf32> -> vector<8x8xf32>
    %cst_26 = arith.constant 0.176776692 : f32
    %60 = vector.broadcast %cst_26 : f32 to vector<8x8xf32>
    %61 = arith.mulf %59, %60 : vector<8x8xf32>
    %62 = vector.broadcast %35 : vector<1x8xf32> to vector<8x8xf32>
    %63 = arith.addf %61, %62 : vector<8x8xf32>
    %cst_27 = arith.constant dense<0xFF800000> : vector<8xf32>
    %64 = vector.multi_reduction <maximumf>, %63, %cst_27 [1] : vector<8x8xf32> to vector<8xf32>
    %65 = vector.shape_cast %64 : vector<8xf32> to vector<8x1xf32>
    %66 = vector.broadcast %65 : vector<8x1xf32> to vector<8x8xf32>
    %67 = arith.subf %63, %66 : vector<8x8xf32>
    %68 = math.exp %67 : vector<8x8xf32>
    %cst_28 = arith.constant dense<0.000000e+00> : vector<8xf32>
    %69 = vector.multi_reduction <add>, %68, %cst_28 [1] : vector<8x8xf32> to vector<8xf32>
    %70 = vector.shape_cast %69 : vector<8xf32> to vector<8x1xf32>
    %71 = tpu.reciprocal %70 {approx = true} : vector<8x1xf32> -> vector<8x1xf32>
    %72 = vector.broadcast %71 : vector<8x1xf32> to vector<8x8xf32>
    %73 = arith.mulf %68, %72 : vector<8x8xf32>
    %cst_29 = arith.constant dense<0.000000e+00> : vector<8x32xf32>
    %74 = tpu.matmul %73, %58, %cst_29 {dimension_numbers = #tpu.dot_dimension_numbers<[1], [0], [0], [1], [0, 0, 1, 1], [], []>} : vector<8x8xf32>, vector<8x32xf32>, vector<8x32xf32> -> vector<8x32xf32>
    %c0_30 = arith.constant 0 : index
    %c32 = arith.constant 32 : index
    %75 = vector.load %arg21[%c0_30, %c32] : memref<16x64xf32, #tpu.memory_space<vmem>>, vector<8x32xf32>
    tpu.vector_store %arg21[%c0_30, %c32], %74 {strides = array<i32>} : memref<16x64xf32, #tpu.memory_space<vmem>>, vector<8x32xf32>,
    %76 = vector.extract_strided_slice %0 {offsets = [1, 0], sizes = [1, 8], strides = [1, 1]} : vector<2x8xf32> to vector<1x8xf32>
    %77 = vector.extract_strided_slice %34 {offsets = [8, 0], sizes = [8, 32], strides = [1, 1]} : vector<16x192xf32> to vector<8x32xf32>
    %78 = vector.extract_strided_slice %34 {offsets = [8, 64], sizes = [8, 32], strides = [1, 1]} : vector<16x192xf32> to vector<8x32xf32>
    %79 = vector.extract_strided_slice %34 {offsets = [8, 128], sizes = [8, 32], strides = [1, 1]} : vector<16x192xf32> to vector<8x32xf32>
    %cst_31 = arith.constant dense<0.000000e+00> : vector<8x8xf32>
    %80 = tpu.matmul %77, %78, %cst_31 {dimension_numbers = #tpu.dot_dimension_numbers<[1], [1], [0], [0], [0, 0, 1, 0], [], []>} : vector<8x32xf32>, vector<8x32xf32>, vector<8x8xf32> -> vector<8x8xf32>
    %cst_32 = arith.constant 0.176776692 : f32
    %81 = vector.broadcast %cst_32 : f32 to vector<8x8xf32>
    %82 = arith.mulf %80, %81 : vector<8x8xf32>
    %83 = vector.broadcast %76 : vector<1x8xf32> to vector<8x8xf32>
    %84 = arith.addf %82, %83 : vector<8x8xf32>
    %cst_33 = arith.constant dense<0xFF800000> : vector<8xf32>
    %85 = vector.multi_reduction <maximumf>, %84, %cst_33 [1] : vector<8x8xf32> to vector<8xf32>
    %86 = vector.shape_cast %85 : vector<8xf32> to vector<8x1xf32>
    %87 = vector.broadcast %86 : vector<8x1xf32> to vector<8x8xf32>
    %88 = arith.subf %84, %87 : vector<8x8xf32>
    %89 = math.exp %88 : vector<8x8xf32>
    %cst_34 = arith.constant dense<0.000000e+00> : vector<8xf32>
    %90 = vector.multi_reduction <add>, %89, %cst_34 [1] : vector<8x8xf32> to vector<8xf32>
    %91 = vector.shape_cast %90 : vector<8xf32> to vector<8x1xf32>
    %92 = tpu.reciprocal %91 {approx = true} : vector<8x1xf32> -> vector<8x1xf32>
    %93 = vector.broadcast %92 : vector<8x1xf32> to vector<8x8xf32>
    %94 = arith.mulf %89, %93 : vector<8x8xf32>
    %cst_35 = arith.constant dense<0.000000e+00> : vector<8x32xf32>
    %95 = tpu.matmul %94, %79, %cst_35 {dimension_numbers = #tpu.dot_dimension_numbers<[1], [0], [0], [1], [0, 0, 1, 1], [], []>} : vector<8x8xf32>, vector<8x32xf32>, vector<8x32xf32> -> vector<8x32xf32>
    %c8 = arith.constant 8 : index
    %c0_36 = arith.constant 0 : index
    %96 = vector.load %arg21[%c8, %c0_36] : memref<16x64xf32, #tpu.memory_space<vmem>>, vector<8x32xf32>
    tpu.vector_store %arg21[%c8, %c0_36], %95 {strides = array<i32>} : memref<16x64xf32, #tpu.memory_space<vmem>>, vector<8x32xf32>,
    %97 = vector.extract_strided_slice %34 {offsets = [8, 32], sizes = [8, 32], strides = [1, 1]} : vector<16x192xf32> to vector<8x32xf32>
    %98 = vector.extract_strided_slice %34 {offsets = [8, 96], sizes = [8, 32], strides = [1, 1]} : vector<16x192xf32> to vector<8x32xf32>
    %99 = vector.extract_strided_slice %34 {offsets = [8, 160], sizes = [8, 32], strides = [1, 1]} : vector<16x192xf32> to vector<8x32xf32>
    %cst_37 = arith.constant dense<0.000000e+00> : vector<8x8xf32>
    %100 = tpu.matmul %97, %98, %cst_37 {dimension_numbers = #tpu.dot_dimension_numbers<[1], [1], [0], [0], [0, 0, 1, 0], [], []>} : vector<8x32xf32>, vector<8x32xf32>, vector<8x8xf32> -> vector<8x8xf32>
    %cst_38 = arith.constant 0.176776692 : f32
    %101 = vector.broadcast %cst_38 : f32 to vector<8x8xf32>
    %102 = arith.mulf %100, %101 : vector<8x8xf32>
    %103 = vector.broadcast %76 : vector<1x8xf32> to vector<8x8xf32>
    %104 = arith.addf %102, %103 : vector<8x8xf32>
    %cst_39 = arith.constant dense<0xFF800000> : vector<8xf32>
    %105 = vector.multi_reduction <maximumf>, %104, %cst_39 [1] : vector<8x8xf32> to vector<8xf32>
    %106 = vector.shape_cast %105 : vector<8xf32> to vector<8x1xf32>
    %107 = vector.broadcast %106 : vector<8x1xf32> to vector<8x8xf32>
    %108 = arith.subf %104, %107 : vector<8x8xf32>
    %109 = math.exp %108 : vector<8x8xf32>
    %cst_40 = arith.constant dense<0.000000e+00> : vector<8xf32>
    %110 = vector.multi_reduction <add>, %109, %cst_40 [1] : vector<8x8xf32> to vector<8xf32>
    %111 = vector.shape_cast %110 : vector<8xf32> to vector<8x1xf32>
    %112 = tpu.reciprocal %111 {approx = true} : vector<8x1xf32> -> vector<8x1xf32>
    %113 = vector.broadcast %112 : vector<8x1xf32> to vector<8x8xf32>
    %114 = arith.mulf %109, %113 : vector<8x8xf32>
    %cst_41 = arith.constant dense<0.000000e+00> : vector<8x32xf32>
    %115 = tpu.matmul %114, %99, %cst_41 {dimension_numbers = #tpu.dot_dimension_numbers<[1], [0], [0], [1], [0, 0, 1, 1], [], []>} : vector<8x8xf32>, vector<8x32xf32>, vector<8x32xf32> -> vector<8x32xf32>
    %c8_42 = arith.constant 8 : index
    %c32_43 = arith.constant 32 : index
    %116 = vector.load %arg21[%c8_42, %c32_43] : memref<16x64xf32, #tpu.memory_space<vmem>>, vector<8x32xf32>
    tpu.vector_store %arg21[%c8_42, %c32_43], %115 {strides = array<i32>} : memref<16x64xf32, #tpu.memory_space<vmem>>, vector<8x32xf32>,
    %c0_44 = arith.constant 0 : index
    %c0_45 = arith.constant 0 : index
    %117 = vector.load %arg21[%c0_44, %c0_45] : memref<16x64xf32, #tpu.memory_space<vmem>>, vector<16x64xf32>
    %c0_46 = arith.constant 0 : index
    %c0_47 = arith.constant 0 : index
    %c0_48 = arith.constant 0 : index
    %118 = vector.load %arg6[%c0_46, %c0_47, %c0_48] : memref<2x64x64xf32, #tpu.memory_space<vmem>>, vector<1x64x64xf32>
    %119 = vector.shape_cast %118 : vector<1x64x64xf32> to vector<64x64xf32>
    %cst_49 = arith.constant dense<0.000000e+00> : vector<16x64xf32>
    %120 = tpu.matmul %117, %119, %cst_49 {dimension_numbers = #tpu.dot_dimension_numbers<[1], [0], [0], [1], [0, 0, 1, 1], [], []>} : vector<16x64xf32>, vector<64x64xf32>, vector<16x64xf32> -> vector<16x64xf32>
    %c0_50 = arith.constant 0 : index
    %c0_51 = arith.constant 0 : index
    %c0_52 = arith.constant 0 : index
    %121 = vector.load %arg7[%c0_50, %c0_51, %c0_52] : memref<2x1x64xf32, #tpu.memory_space<vmem>>, vector<1x1x64xf32>
    %122 = vector.shape_cast %121 : vector<1x1x64xf32> to vector<1x64xf32>
    %123 = vector.broadcast %122 : vector<1x64xf32> to vector<16x64xf32>
    %124 = arith.addf %120, %123 : vector<16x64xf32>
    %125 = arith.addf %27, %124 : vector<16x64xf32>
    %c0_53 = arith.constant 0 : index
    %c0_54 = arith.constant 0 : index
    %c0_55 = arith.constant 0 : index
    %126 = vector.load %arg8[%c0_53, %c0_54, %c0_55] : memref<2x1x64xf32, #tpu.memory_space<vmem>>, vector<1x1x64xf32>
    %127 = vector.shape_cast %126 : vector<1x1x64xf32> to vector<1x64xf32>
    %c0_56 = arith.constant 0 : index
    %c0_57 = arith.constant 0 : index
    %c0_58 = arith.constant 0 : index
    %128 = vector.load %arg9[%c0_56, %c0_57, %c0_58] : memref<2x1x64xf32, #tpu.memory_space<vmem>>, vector<1x1x64xf32>
    %129 = vector.shape_cast %128 : vector<1x1x64xf32> to vector<1x64xf32>
    %cst_59 = arith.constant dense<0.000000e+00> : vector<16xf32>
    %130 = vector.multi_reduction <add>, %125, %cst_59 [1] : vector<16x64xf32> to vector<16xf32>
    %131 = vector.shape_cast %130 : vector<16xf32> to vector<16x1xf32>
    %cst_60 = arith.constant 6.400000e+01 : f32
    %132 = vector.broadcast %cst_60 : f32 to vector<16x1xf32>
    %133 = arith.divf %131, %132 : vector<16x1xf32>
    %134 = vector.broadcast %133 : vector<16x1xf32> to vector<16x64xf32>
    %135 = arith.subf %125, %134 : vector<16x64xf32>
    %136 = vector.broadcast %133 : vector<16x1xf32> to vector<16x64xf32>
    %137 = arith.subf %125, %136 : vector<16x64xf32>
    %138 = arith.mulf %135, %137 : vector<16x64xf32>
    %cst_61 = arith.constant dense<0.000000e+00> : vector<16xf32>
    %139 = vector.multi_reduction <add>, %138, %cst_61 [1] : vector<16x64xf32> to vector<16xf32>
    %140 = vector.shape_cast %139 : vector<16xf32> to vector<16x1xf32>
    %cst_62 = arith.constant 6.400000e+01 : f32
    %141 = vector.broadcast %cst_62 : f32 to vector<16x1xf32>
    %142 = arith.divf %140, %141 : vector<16x1xf32>
    %143 = vector.broadcast %133 : vector<16x1xf32> to vector<16x64xf32>
    %144 = arith.subf %125, %143 : vector<16x64xf32>
    %cst_63 = arith.constant 9.99999996E-13 : f32
    %145 = vector.broadcast %cst_63 : f32 to vector<16x1xf32>
    %146 = arith.addf %142, %145 : vector<16x1xf32>
    %147 = math.rsqrt %146 : vector<16x1xf32>
    %148 = vector.broadcast %147 : vector<16x1xf32> to vector<16x64xf32>
    %149 = arith.mulf %144, %148 : vector<16x64xf32>
    %150 = vector.broadcast %127 : vector<1x64xf32> to vector<16x64xf32>
    %151 = arith.mulf %149, %150 : vector<16x64xf32>
    %152 = vector.broadcast %129 : vector<1x64xf32> to vector<16x64xf32>
    %153 = arith.addf %151, %152 : vector<16x64xf32>
    %c0_64 = arith.constant 0 : index
    %c0_65 = arith.constant 0 : index
    %c0_66 = arith.constant 0 : index
    %154 = vector.load %arg10[%c0_64, %c0_65, %c0_66] : memref<2x64x128xf32, #tpu.memory_space<vmem>>, vector<1x64x128xf32>
    %155 = vector.shape_cast %154 : vector<1x64x128xf32> to vector<64x128xf32>
    %cst_67 = arith.constant dense<0.000000e+00> : vector<16x128xf32>
    %156 = tpu.matmul %153, %155, %cst_67 {dimension_numbers = #tpu.dot_dimension_numbers<[1], [0], [0], [1], [0, 0, 1, 1], [], []>} : vector<16x64xf32>, vector<64x128xf32>, vector<16x128xf32> -> vector<16x128xf32>
    %c0_68 = arith.constant 0 : index
    %c0_69 = arith.constant 0 : index
    %c0_70 = arith.constant 0 : index
    %157 = vector.load %arg11[%c0_68, %c0_69, %c0_70] : memref<2x1x128xf32, #tpu.memory_space<vmem>>, vector<1x1x128xf32>
    %158 = vector.shape_cast %157 : vector<1x1x128xf32> to vector<1x128xf32>
    %159 = vector.broadcast %158 : vector<1x128xf32> to vector<16x128xf32>
    %160 = arith.addf %156, %159 : vector<16x128xf32>
    %161 = arith.mulf %160, %160 : vector<16x128xf32>
    %162 = arith.mulf %160, %161 : vector<16x128xf32>
    %cst_71 = arith.constant 4.471500e-02 : f32
    %163 = vector.broadcast %cst_71 : f32 to vector<16x128xf32>
    %164 = arith.mulf %163, %162 : vector<16x128xf32>
    %165 = arith.addf %160, %164 : vector<16x128xf32>
    %cst_72 = arith.constant 0.797884583 : f32
    %166 = vector.broadcast %cst_72 : f32 to vector<16x128xf32>
    %167 = arith.mulf %166, %165 : vector<16x128xf32>
    %168 = math.tanh %167 : vector<16x128xf32>
    %cst_73 = arith.constant 1.000000e+00 : f32
    %169 = vector.broadcast %cst_73 : f32 to vector<16x128xf32>
    %170 = arith.addf %169, %168 : vector<16x128xf32>
    %cst_74 = arith.constant 5.000000e-01 : f32
    %171 = vector.broadcast %cst_74 : f32 to vector<16x128xf32>
    %172 = arith.mulf %171, %170 : vector<16x128xf32>
    %173 = arith.mulf %160, %172 : vector<16x128xf32>
    %c0_75 = arith.constant 0 : index
    %c0_76 = arith.constant 0 : index
    %c0_77 = arith.constant 0 : index
    %174 = vector.load %arg12[%c0_75, %c0_76, %c0_77] : memref<2x128x64xf32, #tpu.memory_space<vmem>>, vector<1x128x64xf32>
    %175 = vector.shape_cast %174 : vector<1x128x64xf32> to vector<128x64xf32>
    %cst_78 = arith.constant dense<0.000000e+00> : vector<16x64xf32>
    %176 = tpu.matmul %173, %175, %cst_78 {dimension_numbers = #tpu.dot_dimension_numbers<[1], [0], [0], [1], [0, 0, 1, 1], [], []>} : vector<16x128xf32>, vector<128x64xf32>, vector<16x64xf32> -> vector<16x64xf32>
    %c0_79 = arith.constant 0 : index
    %c0_80 = arith.constant 0 : index
    %c0_81 = arith.constant 0 : index
    %177 = vector.load %arg13[%c0_79, %c0_80, %c0_81] : memref<2x1x64xf32, #tpu.memory_space<vmem>>, vector<1x1x64xf32>
    %178 = vector.shape_cast %177 : vector<1x1x64xf32> to vector<1x64xf32>
    %179 = vector.broadcast %178 : vector<1x64xf32> to vector<16x64xf32>
    %180 = arith.addf %176, %179 : vector<16x64xf32>
    %181 = arith.addf %153, %180 : vector<16x64xf32>
    %c0_82 = arith.constant 0 : index
    %c0_83 = arith.constant 0 : index
    %c0_84 = arith.constant 0 : index
    %182 = vector.load %arg14[%c0_82, %c0_83, %c0_84] : memref<2x1x64xf32, #tpu.memory_space<vmem>>, vector<1x1x64xf32>
    %183 = vector.shape_cast %182 : vector<1x1x64xf32> to vector<1x64xf32>
    %c0_85 = arith.constant 0 : index
    %c0_86 = arith.constant 0 : index
    %c0_87 = arith.constant 0 : index
    %184 = vector.load %arg15[%c0_85, %c0_86, %c0_87] : memref<2x1x64xf32, #tpu.memory_space<vmem>>, vector<1x1x64xf32>
    %185 = vector.shape_cast %184 : vector<1x1x64xf32> to vector<1x64xf32>
    %cst_88 = arith.constant dense<0.000000e+00> : vector<16xf32>
    %186 = vector.multi_reduction <add>, %181, %cst_88 [1] : vector<16x64xf32> to vector<16xf32>
    %187 = vector.shape_cast %186 : vector<16xf32> to vector<16x1xf32>
    %cst_89 = arith.constant 6.400000e+01 : f32
    %188 = vector.broadcast %cst_89 : f32 to vector<16x1xf32>
    %189 = arith.divf %187, %188 : vector<16x1xf32>
    %190 = vector.broadcast %189 : vector<16x1xf32> to vector<16x64xf32>
    %191 = arith.subf %181, %190 : vector<16x64xf32>
    %192 = vector.broadcast %189 : vector<16x1xf32> to vector<16x64xf32>
    %193 = arith.subf %181, %192 : vector<16x64xf32>
    %194 = arith.mulf %191, %193 : vector<16x64xf32>
    %cst_90 = arith.constant dense<0.000000e+00> : vector<16xf32>
    %195 = vector.multi_reduction <add>, %194, %cst_90 [1] : vector<16x64xf32> to vector<16xf32>
    %196 = vector.shape_cast %195 : vector<16xf32> to vector<16x1xf32>
    %cst_91 = arith.constant 6.400000e+01 : f32
    %197 = vector.broadcast %cst_91 : f32 to vector<16x1xf32>
    %198 = arith.divf %196, %197 : vector<16x1xf32>
    %199 = vector.broadcast %189 : vector<16x1xf32> to vector<16x64xf32>
    %200 = arith.subf %181, %199 : vector<16x64xf32>
    %cst_92 = arith.constant 9.99999996E-13 : f32
    %201 = vector.broadcast %cst_92 : f32 to vector<16x1xf32>
    %202 = arith.addf %198, %201 : vector<16x1xf32>
    %203 = math.rsqrt %202 : vector<16x1xf32>
    %204 = vector.broadcast %203 : vector<16x1xf32> to vector<16x64xf32>
    %205 = arith.mulf %200, %204 : vector<16x64xf32>
    %206 = vector.broadcast %183 : vector<1x64xf32> to vector<16x64xf32>
    %207 = arith.mulf %205, %206 : vector<16x64xf32>
    %208 = vector.broadcast %185 : vector<1x64xf32> to vector<16x64xf32>
    %209 = arith.addf %207, %208 : vector<16x64xf32>
    %c1 = arith.constant 1 : index
    %c0_93 = arith.constant 0 : index
    %c0_94 = arith.constant 0 : index
    %210 = vector.load %arg4[%c1, %c0_93, %c0_94] : memref<2x64x192xf32, #tpu.memory_space<vmem>>, vector<1x64x192xf32>
    %211 = vector.shape_cast %210 : vector<1x64x192xf32> to vector<64x192xf32>
    %cst_95 = arith.constant dense<0.000000e+00> : vector<16x192xf32>
    %212 = tpu.matmul %209, %211, %cst_95 {dimension_numbers = #tpu.dot_dimension_numbers<[1], [0], [0], [1], [0, 0, 1, 1], [], []>} : vector<16x64xf32>, vector<64x192xf32>, vector<16x192xf32> -> vector<16x192xf32>
    %c1_96 = arith.constant 1 : index
    %c0_97 = arith.constant 0 : index
    %c0_98 = arith.constant 0 : index
    %213 = vector.load %arg5[%c1_96, %c0_97, %c0_98] : memref<2x1x192xf32, #tpu.memory_space<vmem>>, vector<1x1x192xf32>
    %214 = vector.shape_cast %213 : vector<1x1x192xf32> to vector<1x192xf32>
    %215 = vector.broadcast %214 : vector<1x192xf32> to vector<16x192xf32>
    %216 = arith.addf %212, %215 : vector<16x192xf32>
    %217 = vector.extract_strided_slice %0 {offsets = [0, 0], sizes = [1, 8], strides = [1, 1]} : vector<2x8xf32> to vector<1x8xf32>
    %218 = vector.extract_strided_slice %216 {offsets = [0, 0], sizes = [8, 32], strides = [1, 1]} : vector<16x192xf32> to vector<8x32xf32>
    %219 = vector.extract_strided_slice %216 {offsets = [0, 64], sizes = [8, 32], strides = [1, 1]} : vector<16x192xf32> to vector<8x32xf32>
    %220 = vector.extract_strided_slice %216 {offsets = [0, 128], sizes = [8, 32], strides = [1, 1]} : vector<16x192xf32> to vector<8x32xf32>
    %cst_99 = arith.constant dense<0.000000e+00> : vector<8x8xf32>
    %221 = tpu.matmul %218, %219, %cst_99 {dimension_numbers = #tpu.dot_dimension_numbers<[1], [1], [0], [0], [0, 0, 1, 0], [], []>} : vector<8x32xf32>, vector<8x32xf32>, vector<8x8xf32> -> vector<8x8xf32>
    %cst_100 = arith.constant 0.176776692 : f32
    %222 = vector.broadcast %cst_100 : f32 to vector<8x8xf32>
    %223 = arith.mulf %221, %222 : vector<8x8xf32>
    %224 = vector.broadcast %217 : vector<1x8xf32> to vector<8x8xf32>
    %225 = arith.addf %223, %224 : vector<8x8xf32>
    %cst_101 = arith.constant dense<0xFF800000> : vector<8xf32>
    %226 = vector.multi_reduction <maximumf>, %225, %cst_101 [1] : vector<8x8xf32> to vector<8xf32>
    %227 = vector.shape_cast %226 : vector<8xf32> to vector<8x1xf32>
    %228 = vector.broadcast %227 : vector<8x1xf32> to vector<8x8xf32>
    %229 = arith.subf %225, %228 : vector<8x8xf32>
    %230 = math.exp %229 : vector<8x8xf32>
    %cst_102 = arith.constant dense<0.000000e+00> : vector<8xf32>
    %231 = vector.multi_reduction <add>, %230, %cst_102 [1] : vector<8x8xf32> to vector<8xf32>
    %232 = vector.shape_cast %231 : vector<8xf32> to vector<8x1xf32>
    %233 = tpu.reciprocal %232 {approx = true} : vector<8x1xf32> -> vector<8x1xf32>
    %234 = vector.broadcast %233 : vector<8x1xf32> to vector<8x8xf32>
    %235 = arith.mulf %230, %234 : vector<8x8xf32>
    %cst_103 = arith.constant dense<0.000000e+00> : vector<8x32xf32>
    %236 = tpu.matmul %235, %220, %cst_103 {dimension_numbers = #tpu.dot_dimension_numbers<[1], [0], [0], [1], [0, 0, 1, 1], [], []>} : vector<8x8xf32>, vector<8x32xf32>, vector<8x32xf32> -> vector<8x32xf32>
    %c0_104 = arith.constant 0 : index
    %c0_105 = arith.constant 0 : index
    %237 = vector.load %arg21[%c0_104, %c0_105] : memref<16x64xf32, #tpu.memory_space<vmem>>, vector<8x32xf32>
    tpu.vector_store %arg21[%c0_104, %c0_105], %236 {strides = array<i32>} : memref<16x64xf32, #tpu.memory_space<vmem>>, vector<8x32xf32>,
    %238 = vector.extract_strided_slice %216 {offsets = [0, 32], sizes = [8, 32], strides = [1, 1]} : vector<16x192xf32> to vector<8x32xf32>
    %239 = vector.extract_strided_slice %216 {offsets = [0, 96], sizes = [8, 32], strides = [1, 1]} : vector<16x192xf32> to vector<8x32xf32>
    %240 = vector.extract_strided_slice %216 {offsets = [0, 160], sizes = [8, 32], strides = [1, 1]} : vector<16x192xf32> to vector<8x32xf32>
    %cst_106 = arith.constant dense<0.000000e+00> : vector<8x8xf32>
    %241 = tpu.matmul %238, %239, %cst_106 {dimension_numbers = #tpu.dot_dimension_numbers<[1], [1], [0], [0], [0, 0, 1, 0], [], []>} : vector<8x32xf32>, vector<8x32xf32>, vector<8x8xf32> -> vector<8x8xf32>
    %cst_107 = arith.constant 0.176776692 : f32
    %242 = vector.broadcast %cst_107 : f32 to vector<8x8xf32>
    %243 = arith.mulf %241, %242 : vector<8x8xf32>
    %244 = vector.broadcast %217 : vector<1x8xf32> to vector<8x8xf32>
    %245 = arith.addf %243, %244 : vector<8x8xf32>
    %cst_108 = arith.constant dense<0xFF800000> : vector<8xf32>
    %246 = vector.multi_reduction <maximumf>, %245, %cst_108 [1] : vector<8x8xf32> to vector<8xf32>
    %247 = vector.shape_cast %246 : vector<8xf32> to vector<8x1xf32>
    %248 = vector.broadcast %247 : vector<8x1xf32> to vector<8x8xf32>
    %249 = arith.subf %245, %248 : vector<8x8xf32>
    %250 = math.exp %249 : vector<8x8xf32>
    %cst_109 = arith.constant dense<0.000000e+00> : vector<8xf32>
    %251 = vector.multi_reduction <add>, %250, %cst_109 [1] : vector<8x8xf32> to vector<8xf32>
    %252 = vector.shape_cast %251 : vector<8xf32> to vector<8x1xf32>
    %253 = tpu.reciprocal %252 {approx = true} : vector<8x1xf32> -> vector<8x1xf32>
    %254 = vector.broadcast %253 : vector<8x1xf32> to vector<8x8xf32>
    %255 = arith.mulf %250, %254 : vector<8x8xf32>
    %cst_110 = arith.constant dense<0.000000e+00> : vector<8x32xf32>
    %256 = tpu.matmul %255, %240, %cst_110 {dimension_numbers = #tpu.dot_dimension_numbers<[1], [0], [0], [1], [0, 0, 1, 1], [], []>} : vector<8x8xf32>, vector<8x32xf32>, vector<8x32xf32> -> vector<8x32xf32>
    %c0_111 = arith.constant 0 : index
    %c32_112 = arith.constant 32 : index
    %257 = vector.load %arg21[%c0_111, %c32_112] : memref<16x64xf32, #tpu.memory_space<vmem>>, vector<8x32xf32>
    tpu.vector_store %arg21[%c0_111, %c32_112], %256 {strides = array<i32>} : memref<16x64xf32, #tpu.memory_space<vmem>>, vector<8x32xf32>,
    %258 = vector.extract_strided_slice %0 {offsets = [1, 0], sizes = [1, 8], strides = [1, 1]} : vector<2x8xf32> to vector<1x8xf32>
    %259 = vector.extract_strided_slice %216 {offsets = [8, 0], sizes = [8, 32], strides = [1, 1]} : vector<16x192xf32> to vector<8x32xf32>
    %260 = vector.extract_strided_slice %216 {offsets = [8, 64], sizes = [8, 32], strides = [1, 1]} : vector<16x192xf32> to vector<8x32xf32>
    %261 = vector.extract_strided_slice %216 {offsets = [8, 128], sizes = [8, 32], strides = [1, 1]} : vector<16x192xf32> to vector<8x32xf32>
    %cst_113 = arith.constant dense<0.000000e+00> : vector<8x8xf32>
    %262 = tpu.matmul %259, %260, %cst_113 {dimension_numbers = #tpu.dot_dimension_numbers<[1], [1], [0], [0], [0, 0, 1, 0], [], []>} : vector<8x32xf32>, vector<8x32xf32>, vector<8x8xf32> -> vector<8x8xf32>
    %cst_114 = arith.constant 0.176776692 : f32
    %263 = vector.broadcast %cst_114 : f32 to vector<8x8xf32>
    %264 = arith.mulf %262, %263 : vector<8x8xf32>
    %265 = vector.broadcast %258 : vector<1x8xf32> to vector<8x8xf32>
    %266 = arith.addf %264, %265 : vector<8x8xf32>
    %cst_115 = arith.constant dense<0xFF800000> : vector<8xf32>
    %267 = vector.multi_reduction <maximumf>, %266, %cst_115 [1] : vector<8x8xf32> to vector<8xf32>
    %268 = vector.shape_cast %267 : vector<8xf32> to vector<8x1xf32>
    %269 = vector.broadcast %268 : vector<8x1xf32> to vector<8x8xf32>
    %270 = arith.subf %266, %269 : vector<8x8xf32>
    %271 = math.exp %270 : vector<8x8xf32>
    %cst_116 = arith.constant dense<0.000000e+00> : vector<8xf32>
    %272 = vector.multi_reduction <add>, %271, %cst_116 [1] : vector<8x8xf32> to vector<8xf32>
    %273 = vector.shape_cast %272 : vector<8xf32> to vector<8x1xf32>
    %274 = tpu.reciprocal %273 {approx = true} : vector<8x1xf32> -> vector<8x1xf32>
    %275 = vector.broadcast %274 : vector<8x1xf32> to vector<8x8xf32>
    %276 = arith.mulf %271, %275 : vector<8x8xf32>
    %cst_117 = arith.constant dense<0.000000e+00> : vector<8x32xf32>
    %277 = tpu.matmul %276, %261, %cst_117 {dimension_numbers = #tpu.dot_dimension_numbers<[1], [0], [0], [1], [0, 0, 1, 1], [], []>} : vector<8x8xf32>, vector<8x32xf32>, vector<8x32xf32> -> vector<8x32xf32>
    %c8_118 = arith.constant 8 : index
    %c0_119 = arith.constant 0 : index
    %278 = vector.load %arg21[%c8_118, %c0_119] : memref<16x64xf32, #tpu.memory_space<vmem>>, vector<8x32xf32>
    tpu.vector_store %arg21[%c8_118, %c0_119], %277 {strides = array<i32>} : memref<16x64xf32, #tpu.memory_space<vmem>>, vector<8x32xf32>,
    %279 = vector.extract_strided_slice %216 {offsets = [8, 32], sizes = [8, 32], strides = [1, 1]} : vector<16x192xf32> to vector<8x32xf32>
    %280 = vector.extract_strided_slice %216 {offsets = [8, 96], sizes = [8, 32], strides = [1, 1]} : vector<16x192xf32> to vector<8x32xf32>
    %281 = vector.extract_strided_slice %216 {offsets = [8, 160], sizes = [8, 32], strides = [1, 1]} : vector<16x192xf32> to vector<8x32xf32>
    %cst_120 = arith.constant dense<0.000000e+00> : vector<8x8xf32>
    %282 = tpu.matmul %279, %280, %cst_120 {dimension_numbers = #tpu.dot_dimension_numbers<[1], [1], [0], [0], [0, 0, 1, 0], [], []>} : vector<8x32xf32>, vector<8x32xf32>, vector<8x8xf32> -> vector<8x8xf32>
    %cst_121 = arith.constant 0.176776692 : f32
    %283 = vector.broadcast %cst_121 : f32 to vector<8x8xf32>
    %284 = arith.mulf %282, %283 : vector<8x8xf32>
    %285 = vector.broadcast %258 : vector<1x8xf32> to vector<8x8xf32>
    %286 = arith.addf %284, %285 : vector<8x8xf32>
    %cst_122 = arith.constant dense<0xFF800000> : vector<8xf32>
    %287 = vector.multi_reduction <maximumf>, %286, %cst_122 [1] : vector<8x8xf32> to vector<8xf32>
    %288 = vector.shape_cast %287 : vector<8xf32> to vector<8x1xf32>
    %289 = vector.broadcast %288 : vector<8x1xf32> to vector<8x8xf32>
    %290 = arith.subf %286, %289 : vector<8x8xf32>
    %291 = math.exp %290 : vector<8x8xf32>
    %cst_123 = arith.constant dense<0.000000e+00> : vector<8xf32>
    %292 = vector.multi_reduction <add>, %291, %cst_123 [1] : vector<8x8xf32> to vector<8xf32>
    %293 = vector.shape_cast %292 : vector<8xf32> to vector<8x1xf32>
    %294 = tpu.reciprocal %293 {approx = true} : vector<8x1xf32> -> vector<8x1xf32>
    %295 = vector.broadcast %294 : vector<8x1xf32> to vector<8x8xf32>
    %296 = arith.mulf %291, %295 : vector<8x8xf32>
    %cst_124 = arith.constant dense<0.000000e+00> : vector<8x32xf32>
    %297 = tpu.matmul %296, %281, %cst_124 {dimension_numbers = #tpu.dot_dimension_numbers<[1], [0], [0], [1], [0, 0, 1, 1], [], []>} : vector<8x8xf32>, vector<8x32xf32>, vector<8x32xf32> -> vector<8x32xf32>
    %c8_125 = arith.constant 8 : index
    %c32_126 = arith.constant 32 : index
    %298 = vector.load %arg21[%c8_125, %c32_126] : memref<16x64xf32, #tpu.memory_space<vmem>>, vector<8x32xf32>
    tpu.vector_store %arg21[%c8_125, %c32_126], %297 {strides = array<i32>} : memref<16x64xf32, #tpu.memory_space<vmem>>, vector<8x32xf32>,
    %c0_127 = arith.constant 0 : index
    %c0_128 = arith.constant 0 : index
    %299 = vector.load %arg21[%c0_127, %c0_128] : memref<16x64xf32, #tpu.memory_space<vmem>>, vector<16x64xf32>
    %c1_129 = arith.constant 1 : index
    %c0_130 = arith.constant 0 : index
    %c0_131 = arith.constant 0 : index
    %300 = vector.load %arg6[%c1_129, %c0_130, %c0_131] : memref<2x64x64xf32, #tpu.memory_space<vmem>>, vector<1x64x64xf32>
    %301 = vector.shape_cast %300 : vector<1x64x64xf32> to vector<64x64xf32>
    %cst_132 = arith.constant dense<0.000000e+00> : vector<16x64xf32>
    %302 = tpu.matmul %299, %301, %cst_132 {dimension_numbers = #tpu.dot_dimension_numbers<[1], [0], [0], [1], [0, 0, 1, 1], [], []>} : vector<16x64xf32>, vector<64x64xf32>, vector<16x64xf32> -> vector<16x64xf32>
    %c1_133 = arith.constant 1 : index
    %c0_134 = arith.constant 0 : index
    %c0_135 = arith.constant 0 : index
    %303 = vector.load %arg7[%c1_133, %c0_134, %c0_135] : memref<2x1x64xf32, #tpu.memory_space<vmem>>, vector<1x1x64xf32>
    %304 = vector.shape_cast %303 : vector<1x1x64xf32> to vector<1x64xf32>
    %305 = vector.broadcast %304 : vector<1x64xf32> to vector<16x64xf32>
    %306 = arith.addf %302, %305 : vector<16x64xf32>
    %307 = arith.addf %209, %306 : vector<16x64xf32>
    %c1_136 = arith.constant 1 : index
    %c0_137 = arith.constant 0 : index
    %c0_138 = arith.constant 0 : index
    %308 = vector.load %arg8[%c1_136, %c0_137, %c0_138] : memref<2x1x64xf32, #tpu.memory_space<vmem>>, vector<1x1x64xf32>
    %309 = vector.shape_cast %308 : vector<1x1x64xf32> to vector<1x64xf32>
    %c1_139 = arith.constant 1 : index
    %c0_140 = arith.constant 0 : index
    %c0_141 = arith.constant 0 : index
    %310 = vector.load %arg9[%c1_139, %c0_140, %c0_141] : memref<2x1x64xf32, #tpu.memory_space<vmem>>, vector<1x1x64xf32>
    %311 = vector.shape_cast %310 : vector<1x1x64xf32> to vector<1x64xf32>
    %cst_142 = arith.constant dense<0.000000e+00> : vector<16xf32>
    %312 = vector.multi_reduction <add>, %307, %cst_142 [1] : vector<16x64xf32> to vector<16xf32>
    %313 = vector.shape_cast %312 : vector<16xf32> to vector<16x1xf32>
    %cst_143 = arith.constant 6.400000e+01 : f32
    %314 = vector.broadcast %cst_143 : f32 to vector<16x1xf32>
    %315 = arith.divf %313, %314 : vector<16x1xf32>
    %316 = vector.broadcast %315 : vector<16x1xf32> to vector<16x64xf32>
    %317 = arith.subf %307, %316 : vector<16x64xf32>
    %318 = vector.broadcast %315 : vector<16x1xf32> to vector<16x64xf32>
    %319 = arith.subf %307, %318 : vector<16x64xf32>
    %320 = arith.mulf %317, %319 : vector<16x64xf32>
    %cst_144 = arith.constant dense<0.000000e+00> : vector<16xf32>
    %321 = vector.multi_reduction <add>, %320, %cst_144 [1] : vector<16x64xf32> to vector<16xf32>
    %322 = vector.shape_cast %321 : vector<16xf32> to vector<16x1xf32>
    %cst_145 = arith.constant 6.400000e+01 : f32
    %323 = vector.broadcast %cst_145 : f32 to vector<16x1xf32>
    %324 = arith.divf %322, %323 : vector<16x1xf32>
    %325 = vector.broadcast %315 : vector<16x1xf32> to vector<16x64xf32>
    %326 = arith.subf %307, %325 : vector<16x64xf32>
    %cst_146 = arith.constant 9.99999996E-13 : f32
    %327 = vector.broadcast %cst_146 : f32 to vector<16x1xf32>
    %328 = arith.addf %324, %327 : vector<16x1xf32>
    %329 = math.rsqrt %328 : vector<16x1xf32>
    %330 = vector.broadcast %329 : vector<16x1xf32> to vector<16x64xf32>
    %331 = arith.mulf %326, %330 : vector<16x64xf32>
    %332 = vector.broadcast %309 : vector<1x64xf32> to vector<16x64xf32>
    %333 = arith.mulf %331, %332 : vector<16x64xf32>
    %334 = vector.broadcast %311 : vector<1x64xf32> to vector<16x64xf32>
    %335 = arith.addf %333, %334 : vector<16x64xf32>
    %c1_147 = arith.constant 1 : index
    %c0_148 = arith.constant 0 : index
    %c0_149 = arith.constant 0 : index
    %336 = vector.load %arg10[%c1_147, %c0_148, %c0_149] : memref<2x64x128xf32, #tpu.memory_space<vmem>>, vector<1x64x128xf32>
    %337 = vector.shape_cast %336 : vector<1x64x128xf32> to vector<64x128xf32>
    %cst_150 = arith.constant dense<0.000000e+00> : vector<16x128xf32>
    %338 = tpu.matmul %335, %337, %cst_150 {dimension_numbers = #tpu.dot_dimension_numbers<[1], [0], [0], [1], [0, 0, 1, 1], [], []>} : vector<16x64xf32>, vector<64x128xf32>, vector<16x128xf32> -> vector<16x128xf32>
    %c1_151 = arith.constant 1 : index
    %c0_152 = arith.constant 0 : index
    %c0_153 = arith.constant 0 : index
    %339 = vector.load %arg11[%c1_151, %c0_152, %c0_153] : memref<2x1x128xf32, #tpu.memory_space<vmem>>, vector<1x1x128xf32>
    %340 = vector.shape_cast %339 : vector<1x1x128xf32> to vector<1x128xf32>
    %341 = vector.broadcast %340 : vector<1x128xf32> to vector<16x128xf32>
    %342 = arith.addf %338, %341 : vector<16x128xf32>
    %343 = arith.mulf %342, %342 : vector<16x128xf32>
    %344 = arith.mulf %342, %343 : vector<16x128xf32>
    %cst_154 = arith.constant 4.471500e-02 : f32
    %345 = vector.broadcast %cst_154 : f32 to vector<16x128xf32>
    %346 = arith.mulf %345, %344 : vector<16x128xf32>
    %347 = arith.addf %342, %346 : vector<16x128xf32>
    %cst_155 = arith.constant 0.797884583 : f32
    %348 = vector.broadcast %cst_155 : f32 to vector<16x128xf32>
    %349 = arith.mulf %348, %347 : vector<16x128xf32>
    %350 = math.tanh %349 : vector<16x128xf32>
    %cst_156 = arith.constant 1.000000e+00 : f32
    %351 = vector.broadcast %cst_156 : f32 to vector<16x128xf32>
    %352 = arith.addf %351, %350 : vector<16x128xf32>
    %cst_157 = arith.constant 5.000000e-01 : f32
    %353 = vector.broadcast %cst_157 : f32 to vector<16x128xf32>
    %354 = arith.mulf %353, %352 : vector<16x128xf32>
    %355 = arith.mulf %342, %354 : vector<16x128xf32>
    %c1_158 = arith.constant 1 : index
    %c0_159 = arith.constant 0 : index
    %c0_160 = arith.constant 0 : index
    %356 = vector.load %arg12[%c1_158, %c0_159, %c0_160] : memref<2x128x64xf32, #tpu.memory_space<vmem>>, vector<1x128x64xf32>
    %357 = vector.shape_cast %356 : vector<1x128x64xf32> to vector<128x64xf32>
    %cst_161 = arith.constant dense<0.000000e+00> : vector<16x64xf32>
    %358 = tpu.matmul %355, %357, %cst_161 {dimension_numbers = #tpu.dot_dimension_numbers<[1], [0], [0], [1], [0, 0, 1, 1], [], []>} : vector<16x128xf32>, vector<128x64xf32>, vector<16x64xf32> -> vector<16x64xf32>
    %c1_162 = arith.constant 1 : index
    %c0_163 = arith.constant 0 : index
    %c0_164 = arith.constant 0 : index
    %359 = vector.load %arg13[%c1_162, %c0_163, %c0_164] : memref<2x1x64xf32, #tpu.memory_space<vmem>>, vector<1x1x64xf32>
    %360 = vector.shape_cast %359 : vector<1x1x64xf32> to vector<1x64xf32>
    %361 = vector.broadcast %360 : vector<1x64xf32> to vector<16x64xf32>
    %362 = arith.addf %358, %361 : vector<16x64xf32>
    %363 = arith.addf %335, %362 : vector<16x64xf32>
    %c1_165 = arith.constant 1 : index
    %c0_166 = arith.constant 0 : index
    %c0_167 = arith.constant 0 : index
    %364 = vector.load %arg14[%c1_165, %c0_166, %c0_167] : memref<2x1x64xf32, #tpu.memory_space<vmem>>, vector<1x1x64xf32>
    %365 = vector.shape_cast %364 : vector<1x1x64xf32> to vector<1x64xf32>
    %c1_168 = arith.constant 1 : index
    %c0_169 = arith.constant 0 : index
    %c0_170 = arith.constant 0 : index
    %366 = vector.load %arg15[%c1_168, %c0_169, %c0_170] : memref<2x1x64xf32, #tpu.memory_space<vmem>>, vector<1x1x64xf32>
    %367 = vector.shape_cast %366 : vector<1x1x64xf32> to vector<1x64xf32>
    %cst_171 = arith.constant dense<0.000000e+00> : vector<16xf32>
    %368 = vector.multi_reduction <add>, %363, %cst_171 [1] : vector<16x64xf32> to vector<16xf32>
    %369 = vector.shape_cast %368 : vector<16xf32> to vector<16x1xf32>
    %cst_172 = arith.constant 6.400000e+01 : f32
    %370 = vector.broadcast %cst_172 : f32 to vector<16x1xf32>
    %371 = arith.divf %369, %370 : vector<16x1xf32>
    %372 = vector.broadcast %371 : vector<16x1xf32> to vector<16x64xf32>
    %373 = arith.subf %363, %372 : vector<16x64xf32>
    %374 = vector.broadcast %371 : vector<16x1xf32> to vector<16x64xf32>
    %375 = arith.subf %363, %374 : vector<16x64xf32>
    %376 = arith.mulf %373, %375 : vector<16x64xf32>
    %cst_173 = arith.constant dense<0.000000e+00> : vector<16xf32>
    %377 = vector.multi_reduction <add>, %376, %cst_173 [1] : vector<16x64xf32> to vector<16xf32>
    %378 = vector.shape_cast %377 : vector<16xf32> to vector<16x1xf32>
    %cst_174 = arith.constant 6.400000e+01 : f32
    %379 = vector.broadcast %cst_174 : f32 to vector<16x1xf32>
    %380 = arith.divf %378, %379 : vector<16x1xf32>
    %381 = vector.broadcast %371 : vector<16x1xf32> to vector<16x64xf32>
    %382 = arith.subf %363, %381 : vector<16x64xf32>
    %cst_175 = arith.constant 9.99999996E-13 : f32
    %383 = vector.broadcast %cst_175 : f32 to vector<16x1xf32>
    %384 = arith.addf %380, %383 : vector<16x1xf32>
    %385 = math.rsqrt %384 : vector<16x1xf32>
    %386 = vector.broadcast %385 : vector<16x1xf32> to vector<16x64xf32>
    %387 = arith.mulf %382, %386 : vector<16x64xf32>
    %388 = vector.broadcast %365 : vector<1x64xf32> to vector<16x64xf32>
    %389 = arith.mulf %387, %388 : vector<16x64xf32>
    %390 = vector.broadcast %367 : vector<1x64xf32> to vector<16x64xf32>
    %391 = arith.addf %389, %390 : vector<16x64xf32>
    %392 = vector.extract_strided_slice %391 {offsets = [0, 0], sizes = [1, 64], strides = [1, 1]} : vector<16x64xf32> to vector<1x64xf32>
    %c0_176 = arith.constant 0 : index
    %c0_177 = arith.constant 0 : index
    %393 = vector.load %arg16[%c0_176, %c0_177] : memref<64x64xf32, #tpu.memory_space<vmem>>, vector<64x64xf32>
    %cst_178 = arith.constant dense<0.000000e+00> : vector<1x64xf32>
    %394 = tpu.matmul %392, %393, %cst_178 {dimension_numbers = #tpu.dot_dimension_numbers<[1], [0], [0], [1], [0, 0, 1, 1], [], []>} : vector<1x64xf32>, vector<64x64xf32>, vector<1x64xf32> -> vector<1x64xf32>
    %c0_179 = arith.constant 0 : index
    %c0_180 = arith.constant 0 : index
    %395 = vector.load %arg17[%c0_179, %c0_180] : memref<1x64xf32, #tpu.memory_space<vmem>>, vector<1x64xf32>
    %396 = arith.addf %394, %395 : vector<1x64xf32>
    %397 = math.tanh %396 : vector<1x64xf32>
    %c0_181 = arith.constant 0 : index
    %c0_182 = arith.constant 0 : index
    %398 = vector.load %arg18[%c0_181, %c0_182] : memref<64x128xf32, #tpu.memory_space<vmem>>, vector<64x128xf32>
    %cst_183 = arith.constant dense<0.000000e+00> : vector<1x128xf32>
    %399 = tpu.matmul %397, %398, %cst_183 {dimension_numbers = #tpu.dot_dimension_numbers<[1], [0], [0], [1], [0, 0, 1, 1], [], []>} : vector<1x64xf32>, vector<64x128xf32>, vector<1x128xf32> -> vector<1x128xf32>
    %c0_184 = arith.constant 0 : index
    %c0_185 = arith.constant 0 : index
    %400 = vector.load %arg19[%c0_184, %c0_185] : memref<1x128xf32, #tpu.memory_space<vmem>>, vector<1x128xf32>
    %401 = arith.addf %399, %400 : vector<1x128xf32>
    %c0_186 = arith.constant 0 : index
    %c0_187 = arith.constant 0 : index
    %402 = vector.load %arg20[%c0_186, %c0_187] : memref<2x128xf32, #tpu.memory_space<vmem>>, vector<1x128xf32>
    tpu.vector_store %arg20[%c0_186, %c0_187], %401 {strides = array<i32>} : memref<2x128xf32, #tpu.memory_space<vmem>>, vector<1x128xf32>,
    %403 = vector.extract_strided_slice %391 {offsets = [8, 0], sizes = [1, 64], strides = [1, 1]} : vector<16x64xf32> to vector<1x64xf32>
    %c0_188 = arith.constant 0 : index
    %c0_189 = arith.constant 0 : index
    %404 = vector.load %arg16[%c0_188, %c0_189] : memref<64x64xf32, #tpu.memory_space<vmem>>, vector<64x64xf32>
    %cst_190 = arith.constant dense<0.000000e+00> : vector<1x64xf32>
    %405 = tpu.matmul %403, %404, %cst_190 {dimension_numbers = #tpu.dot_dimension_numbers<[1], [0], [0], [1], [0, 0, 1, 1], [], []>} : vector<1x64xf32>, vector<64x64xf32>, vector<1x64xf32> -> vector<1x64xf32>
    %c0_191 = arith.constant 0 : index
    %c0_192 = arith.constant 0 : index
    %406 = vector.load %arg17[%c0_191, %c0_192] : memref<1x64xf32, #tpu.memory_space<vmem>>, vector<1x64xf32>
    %407 = arith.addf %405, %406 : vector<1x64xf32>
    %408 = math.tanh %407 : vector<1x64xf32>
    %c0_193 = arith.constant 0 : index
    %c0_194 = arith.constant 0 : index
    %409 = vector.load %arg18[%c0_193, %c0_194] : memref<64x128xf32, #tpu.memory_space<vmem>>, vector<64x128xf32>
    %cst_195 = arith.constant dense<0.000000e+00> : vector<1x128xf32>
    %410 = tpu.matmul %408, %409, %cst_195 {dimension_numbers = #tpu.dot_dimension_numbers<[1], [0], [0], [1], [0, 0, 1, 1], [], []>} : vector<1x64xf32>, vector<64x128xf32>, vector<1x128xf32> -> vector<1x128xf32>
    %c0_196 = arith.constant 0 : index
    %c0_197 = arith.constant 0 : index
    %411 = vector.load %arg19[%c0_196, %c0_197] : memref<1x128xf32, #tpu.memory_space<vmem>>, vector<1x128xf32>
    %412 = arith.addf %410, %411 : vector<1x128xf32>
    %c1_198 = arith.constant 1 : index
    %c0_199 = arith.constant 0 : index
    %413 = vector.load %arg20[%c1_198, %c0_199] : memref<2x128xf32, #tpu.memory_space<vmem>>, vector<1x128xf32>
    tpu.vector_store %arg20[%c1_198, %c0_199], %412 {strides = array<i32>} : memref<2x128xf32, #tpu.memory_space<vmem>>, vector<1x128xf32>,
    return
  }
}

</mosaic_0001>

<bundles_post_ra>
// kernel: finetuned_llm_forward.1
= control target key start
LH: loop header
LB: loop body
LE: loop exit
PB: predicated region body
PF: predicated region fallthrough
CT: control target
= control target key end

     0   :  { %s2517_s0 = inlined_call_operand.vmem [shape: f32[16,64], index: 0, kind: input, shape index: {}]   ;;  %s2518_s1 = inlined_call_operand.vmem [shape: f32[2,8], index: 1, kind: input, shape index: {}]   ;;  %s2519_s2 = inlined_call_operand.vmem [shape: f32[1,64], index: 2, kind: input, shape index: {}]   ;;  %s2520_s3 = inlined_call_operand.vmem [shape: f32[1,64], index: 3, kind: input, shape index: {}]   ;;  %s2521_s4 = inlined_call_operand.vmem [shape: f32[2,64,192], index: 4, kind: input, shape index: {}]   ;;  %s2522_s5 = inlined_call_operand.vmem [shape: f32[2,1,192], index: 5, kind: input, shape index: {}]   ;;  %s2523_s6 = inlined_call_operand.vmem [shape: f32[2,64,64], index: 6, kind: input, shape index: {}]   ;;  %s2524_s7 = inlined_call_operand.vmem [shape: f32[2,1,64], index: 7, kind: input, shape index: {}]   ;;  %s2525_s8 = inlined_call_operand.vmem [shape: f32[2,1,64], index: 8, kind: input, shape index: {}]   ;;  %s2526_s9 = inlined_call_operand.vmem [shape: f32[2,1,64], index: 9, kind: input, shape index: {}]   ;;  %s2527_s10 = inlined_call_operand.vmem [shape: f32[2,64,128], index: 10, kind: input, shape index: {}]   ;;  %s2528_s11 = inlined_call_operand.vmem [shape: f32[2,1,128], index: 11, kind: input, shape index: {}]   ;;  %s2529_s12 = inlined_call_operand.vmem [shape: f32[2,128,64], index: 12, kind: input, shape index: {}]   ;;  %s2530_s13 = inlined_call_operand.vmem [shape: f32[2,1,64], index: 13, kind: input, shape index: {}]   ;;  %s2531_s14 = inlined_call_operand.vmem [shape: f32[2,1,64], index: 14, kind: input, shape index: {}]   ;;  %s2532_s15 = inlined_call_operand.vmem [shape: f32[2,1,64], index: 15, kind: input, shape index: {}]   ;;  %s2533_s16 = inlined_call_operand.vmem [shape: f32[64,64], index: 16, kind: input, shape index: {}]   ;;  %s2534_s17 = inlined_call_operand.vmem [shape: f32[1,64], index: 17, kind: input, shape index: {}]   ;;  %s2535_s18 = inlined_call_operand.hbm [shape: f32[64,128], index: 18, kind: input, shape index: {}]   ;;  %s2536_s19 = inlined_call_operand.vmem [shape: f32[1,128], index: 19, kind: input, shape index: {}]   ;;  %s2537_s20 = inlined_call_operand.hbm [shape: f32[2,128], index: 20, kind: output, shape index: {}]  }
   0x1   :  { %2540 = sst [smem:[#allocation9_spill]] %s2517_s0 }
   0x2   :  { %2541 = sst [smem:[#allocation10_spill]] %s2518_s1 }
   0x3   :  { %2542 = sst [smem:[#allocation11_spill]] %s2519_s2 }
   0x4   :  { %2543 = sst [smem:[#allocation12_spill]] %s2520_s3 }
   0x5   :  { %2544 = sst [smem:[#allocation13_spill]] %s2521_s4 }
   0x6   :  { %25 = vsyncpa [#allocation4], 0 }
   0x7   :  { %26 = vsyncpa [#allocation5], 0  ;;  %s67_s23 = sshll.u32 %s2535_s18, 4  ;;  %s1775_s24 = smov [#allocation3]   ;;  %s68_s23 = int_to_ptr.hbm [resolvable:$true] %s67_s23 }
   0x8   :  { %s69_s2 = sshll.u32 %s1775_s24, 4  ;;  %s1776_s25 = smov 128   ;;  %s70_s2 = int_to_ptr.vmem [resolvable:$true] %s69_s2 }
   0x9   :  { %s1777_s3 = smov 8  }
   0xa   :  { %75 = dma.hbm_to_vmem [thread:$0]  %s68_s23, 1024, %s70_s2, [#allocation4], %s1776_s25, %s1776_s25, %s1777_s3  }
   0xb   :  { %1771 = dma.done.wait [#allocation4], 1024  }
   0xc   :  { %1772 = vsyncadd [#allocation4], 4294966272  ;;  %vm87_vm0 = vcmask 523264   ;;  %s2545_s28 = sld [smem:[#allocation9_spill]]  ;;  %v1778_v2 = vmov 64.0   ;;  %s1779_s26 = smov 64  }
   0xd   :  { %1657 = vrcp.f32 %v1778_v2  ;;  %s2546_s29 = sld [smem:[#allocation13_spill]]  ;;  %v1969_v45 = vld [vmem:[%s2522_s5] sm:$0x3]  ;;  %vm226_vm5 = vcmask 261120   ;;  %vm254_vm6 = vcmask 64512   ;;  %s1781_s21 = smov 96  }
   0xe   :  { %s2547_s22 = sld [smem:[#allocation11_spill]]  ;;  %v167_v46 = vperm.slane %v1969_v45, 0  ;;  %v168_v47 = vperm.slane %v1969_v45, 1  ;;  %vm362_vm10 = vcmask 523520   ;;  %s1523_s1 = sshll.u32 %s2537_s20, 4  ;;  %s1524_s1 = int_to_ptr.hbm [resolvable:$true] %s1523_s1 }
   0xf   :  { %s2548_s2 = sld [smem:[#allocation12_spill]] }
  0x10   :  { %s2549_s0 = sld [smem:[#allocation10_spill]] }
  0x12   :  { %v83_v0 = vld [vmem:[%s2545_s28] sm:$0xff]  ;;  %v84_v52 = vld [vmem:[%s2545_s28 + $0x8] sm:$0xff]  ;;  %s1780_s28 = smov 32  }
  0x13   :  { %v88_v1 = vsel %vm87_vm0, %v83_v0, 0.0  ;;  %v1658_v3 = vpop.eup %1657  ;;  %v163_v14 = vld [vmem:[%s2546_s29 + $0x70] sm:$0xff]  ;;  %v164_v15 = vld [vmem:[%s2546_s29 + $0x78] sm:$0xff]  ;;  %v161_v16 = vld [vmem:[%s2546_s29 + $0x60] sm:$0xff]  ;;  %v91_v53 = vsel %vm87_vm0, %v84_v52, 0.0 }
  0x14   :  { %89 = vadd.xlane.f32.xlu0 %v88_v1  ;;  %v95_v4 = vmul.f32 64.0, %v1658_v3  ;;  %vm99_vm1 = vweird.f32 %v1658_v3  ;;  %185 = vmatpush.msra.mxu0 %v163_v14  ;;  %v162_v17 = vld [vmem:[%s2546_s29 + $0x68] sm:$0xff]  ;;  %v159_v18 = vld [vmem:[%s2546_s29 + $0x50] sm:$0xff]  ;;  %v160_v19 = vld [vmem:[%s2546_s29 + $0x58] sm:$0xff] }
  0x15   :  { %208 = vmatpush.msra.mxu1 %v164_v15  ;;  %v157_v20 = vld [vmem:[%s2546_s29 + $0x40] sm:$0xff]  ;;  %v158_v21 = vld [vmem:[%s2546_s29 + $0x48] sm:$0xff]  ;;  %v155_v22 = vld [vmem:[%s2546_s29 + $0x30] sm:$0xff] }
  0x16   :  { %v96_v5 = vsub.f32 1.0, %v95_v4  ;;  %186 = vmatpush.msra.mxu0 %v161_v16  ;;  %v156_v23 = vld [vmem:[%s2546_s29 + $0x38] sm:$0xff]  ;;  %v153_v24 = vld [vmem:[%s2546_s29 + $0x20] sm:$0xff]  ;;  %v154_v25 = vld [vmem:[%s2546_s29 + $0x28] sm:$0xff] }
  0x17   :  { %209 = vmatpush.msra.mxu1 %v162_v17  ;;  %v151_v26 = vld [vmem:[%s2546_s29 + $0x10] sm:$0xff]  ;;  %v152_v27 = vld [vmem:[%s2546_s29 + $0x18] sm:$0xff]  ;;  %v149_v28 = vld [vmem:[%s2546_s29] sm:$0xff] }
  0x18   :  { %v97_v6 = vmul.f32 %v1658_v3, %v96_v5  ;;  %187 = vmatpush.msra.mxu0 %v159_v18  ;;  %v150_v29 = vld [vmem:[%s2546_s29 + $0x8] sm:$0xff]  ;;  %v1951_v39 = vld [vmem:[%s2547_s22] ss:$0 sm:$0xff] }
  0x19   :  { %210 = vmatpush.msra.mxu1 %v160_v19  ;;  %v1956_v42 = vld [vmem:[%s2548_s2] ss:$0 sm:$0xff] }
  0x1a   :  { %v98_v7 = vadd.f32 %v1658_v3, %v97_v6  ;;  %188 = vmatpush.msra.mxu0 %v157_v20  ;;  %v1990_v56 = vld [vmem:[%s2549_s0] sm:$0x3] }
  0x1b   :  { %211 = vmatpush.msra.mxu1 %v158_v21  ;;  %v1994_v58 = vperm.slane %v1990_v56, 0 }
  0x1c   :  { %v1895_v8 = vsel %vm99_vm1, %v1658_v3, %v98_v7  ;;  %189 = vmatpush.msra.mxu0 %v155_v22 }
  0x1d   :  { %212 = vmatpush.msra.mxu1 %v156_v23 }
  0x1e   :  { %190 = vmatpush.msra.mxu0 %v153_v24 }
  0x1f   :  { %213 = vmatpush.msra.mxu1 %v154_v25 }
  0x20   :  { %191 = vmatpush.msra.mxu0 %v151_v26 }
  0x21   :  { %214 = vmatpush.msra.mxu1 %v152_v27 }
  0x22   :  { %192 = vmatpush.msra.mxu0 %v149_v28 }
  0x23   :  { %215 = vmatpush.msra.mxu1 %v150_v29 }
  0x87   :  { %v90_v9 = vpop.xlane.xlu0 %89 }
  0x88   :  { %v101_v10 = vmul.f32 %v1895_v8, %v90_v9 }
  0x8a   :  { %v103_v11 = vsub.f32 %v83_v0, %v101_v10 }
  0x8c   :  { %v105_v12 = vmul.f32 %v103_v11, %v103_v11 }
  0x8e   :  { %v107_v13 = vsel %vm87_vm0, %v105_v12, 0.0 }
  0x8f   :  { %108 = vadd.xlane.f32.xlu0 %v107_v13 }
 0x102   :  { %v109_v30 = vpop.xlane.xlu0 %108 }
 0x103   :  { %v113_v31 = vmul.f32 %v109_v30, %v1895_v8 }
 0x105   :  { %v115_v32 = vadd.f32 1e-12, %v113_v31 }
 0x107   :  { %1659 = vrsqrt.f32 %v115_v32  ;;  %vm123_vm3 = vweird.f32 %v115_v32 }
 0x10d   :  { %v1660_v33 = vpop.eup %1659 }
 0x10e   :  { %v118_v34 = vmul.f32 %v1660_v33, %v115_v32  ;;  %vm124_vm2 = vweird.f32 %v1660_v33 }
 0x10f   :  { %vm125_vm4 = vmor %vm123_vm3, %vm124_vm2 }
 0x110   :  { %v119_v35 = vmul.f32 %v1660_v33, %v118_v34 }
 0x112   :  { %v120_v36 = vmul.f32 0.5, %v119_v35 }
 0x114   :  { %v121_v37 = vsub.f32 1.5, %v120_v36 }
 0x116   :  { %v122_v38 = vmul.f32 %v1660_v33, %v121_v37 }
 0x118   :  { %v126_v40 = vsel %vm125_vm4, %v1660_v33, %v122_v38 }
 0x119   :  { %v137_v41 = vmul.f32 %v126_v40, %v103_v11 }
 0x11b   :  { %v142_v43 = vmul.f32 %v1951_v39, %v137_v41 }
 0x11d   :  { %v1960_v44 = vadd.f32 %v1956_v42, %v142_v43 }
 0x11f   :  { %1533 = vmatmul.msk.f32.vlgmr.msra.gmra.mxu0 %vm87_vm0, %v1960_v44  ;;  %1535 = vmatmul.msk.f32.vlgmr.msra.gmra.mxu1 %vm87_vm0, %v1960_v44 }
 0x19c   :  { %v194_v48 = vpop.f32.mrf.mxu0  ;;  %v217_v49 = vpop.f32.mrf.mxu1 }
 0x19d   :  { %v195_v50 = vadd.f32 %v194_v48, %v167_v46  ;;  %v1977_v51 = vadd.f32 %v217_v49, %v168_v47 }
 0x19f   :  { %284 = vmatpush.msra.mxu3 %v1977_v51  ;;  %224 = vrot.lane.b32.xlu1 %v195_v50, %s1779_s26 }
 0x1c9   :  { %92 = vadd.xlane.f32.xlu1 %v91_v53 }
 0x211   :  { %v225_v54 = vpop.permute.xlu1 %224 }
 0x212   :  { %1537 = vmatpush.xpose.msk.msra.mxu2 %vm226_vm5, %v225_v54 }
 0x215   :  { %1538 = vmatmul.msk.f32.vlgmr.msra.gmra.mxu2 %vm226_vm5, %v195_v50 }
 0x23c   :  { %v93_v55 = vpop.xlane.xlu1 %92 }
 0x23d   :  { %v102_v57 = vmul.f32 %v1895_v8, %v93_v55 }
 0x23f   :  { %v104_v61 = vsub.f32 %v84_v52, %v102_v57 }
 0x241   :  { %v106_v0 = vmul.f32 %v104_v61, %v104_v61 }
 0x243   :  { %v110_v1 = vsel %vm87_vm0, %v106_v0, 0.0 }
 0x298   :  { %v248_v59 = vpop.f32.mrf.mxu2 }
 0x299   :  { %v251_v60 = vmul.f32 0.17677669, %v248_v59 }
 0x29b   :  { %v253_v62 = vadd.f32 %v1994_v58, %v251_v60 }
 0x29d   :  { %v255_v63 = vsel %vm254_vm6, %v253_v62, -inf }
 0x29e   :  { %256 = vmax.xlane.f32.xlu2 %v255_v63 }
 0x2a6   :  { %111 = vadd.xlane.f32.xlu2 %v110_v1 }
 0x2be   :  { %292 = vrot.lane.b32.xlu2 %v195_v50, %s1780_s28 }
 0x311   :  { %v257_v2 = vpop.xlane.xlu2 %256 }
 0x312   :  { %v258_v3 = vsub.f32 %v253_v62, %v257_v2 }
 0x314   :  { %v259_v4 = vmul.f32 1.442695, %v258_v3 }
 0x316   :  { %1661 = vpow2.f32 %v259_v4 }
 0x319   :  { %v112_v5 = vpop.xlane.xlu2 %111 }
 0x31a   :  { %v114_v6 = vmul.f32 %v112_v5, %v1895_v8 }
 0x31c   :  { %v1662_v7 = vpop.eup %1661  ;;  %v116_v9 = vadd.f32 1e-12, %v114_v6 }
 0x31d   :  { %v261_v10 = vsel %vm254_vm6, %v1662_v7, 0.0 }
 0x31e   :  { %1663 = vrsqrt.f32 %v116_v9  ;;  %262 = vadd.xlane.f32.xlu0 %v261_v10  ;;  %vm133_vm7 = vweird.f32 %v116_v9 }
 0x321   :  { %v293_v11 = vpop.permute.xlu2 %292 }
 0x322   :  { %1540 = vmatpush.xpose.msk.msrb.mxu3 %vm226_vm5, %v293_v11 }
 0x324   :  { %v1664_v12 = vpop.eup %1663 }
 0x325   :  { %v128_v13 = vmul.f32 %v1664_v12, %v116_v9  ;;  %vm134_vm8 = vweird.f32 %v1664_v12 }
 0x326   :  { %vm135_vm9 = vmor %vm133_vm7, %vm134_vm8 }
 0x327   :  { %v129_v14 = vmul.f32 %v1664_v12, %v128_v13 }
 0x329   :  { %v130_v15 = vmul.f32 0.5, %v129_v14  ;;  %v510_v14 = vld [vmem:[%s2523_s6 + $0x30] sm:$0xff] }
 0x32b   :  { %v131_v16 = vsub.f32 1.5, %v130_v15  ;;  %v509_v15 = vld [vmem:[%s2523_s6 + $0x28] sm:$0xff] }
 0x32d   :  { %v132_v17 = vmul.f32 %v1664_v12, %v131_v16  ;;  %v508_v16 = vld [vmem:[%s2523_s6 + $0x20] sm:$0xff] }
 0x32f   :  { %v136_v18 = vsel %vm135_vm9, %v1664_v12, %v132_v17  ;;  %v507_v17 = vld [vmem:[%s2523_s6 + $0x18] sm:$0xff] }
 0x330   :  { %v138_v19 = vmul.f32 %v136_v18, %v104_v61  ;;  %v506_v18 = vld [vmem:[%s2523_s6 + $0x10] sm:$0xff] }
 0x332   :  { %290 = vrot.lane.b32.xlu0 %v195_v50, %s1781_s21  ;;  %v143_v20 = vmul.f32 %v1951_v39, %v138_v19  ;;  %v2031_v39 = vperm.slane %v1990_v56, 1  ;;  %v505_v19 = vld [vmem:[%s2523_s6 + $0x8] sm:$0xff] }
 0x334   :  { %v2006_v21 = vadd.f32 %v1956_v42, %v143_v20  ;;  %v504_v20 = vld [vmem:[%s2523_s6] sm:$0xff] }
 0x336   :  { %1534 = vmatmul.msk.f32.gmra.mxu0 %vm87_vm0, %v2006_v21  ;;  %1536 = vmatmul.msk.f32.gmra.mxu1 %vm87_vm0, %v2006_v21 }
 0x391   :  { %v263_v22 = vpop.xlane.xlu0 %262 }
 0x392   :  { %1665 = vrcp.f32 %v263_v22 }
 0x398   :  { %v1666_v23 = vpop.eup %1665 }
 0x399   :  { %v265_v24 = vmul.f32 %v1666_v23, %v1662_v7  ;;  %v511_v7 = vld [vmem:[%s2523_s6 + $0x38] sm:$0xff] }
 0x39b   :  { %1539 = vmatmul.msk.f32.vlgmr.msra.gmra.mxu3 %vm254_vm6, %v265_v24 }
 0x3a4   :  { %v291_v25 = vpop.permute.xlu0 %290 }
 0x3a5   :  { %1541 = vmatmul.msk.f32.vlgmr.msrb.gmra.mxu3 %vm226_vm5, %v291_v25 }
 0x3b3   :  { %v197_v26 = vpop.f32.mrf.mxu0  ;;  %v220_v30 = vpop.f32.mrf.mxu1 }
 0x3b4   :  { %v198_v27 = vadd.f32 %v197_v26, %v167_v46  ;;  %v221_v32 = vadd.f32 %v220_v30, %v168_v47 }
 0x3b6   :  { %431 = vrot.lane.b32.xlu0 %v198_v27, %s1780_s28  ;;  %365 = vrot.lane.b32.xlu2 %v198_v27, %s1779_s26 }
 0x3be   :  { %429 = vrot.lane.b32.xlu2 %v198_v27, %s1781_s21 }
 0x3c6   :  { %332 = vrot.lane.b32.xlu2 %v1977_v51, %s1781_s21 }
 0x410   :  { %v366_v28 = vpop.permute.xlu2 %365 }
 0x411   :  { %1543 = vmatpush.xpose.msk.msra.mxu3 %vm226_vm5, %v366_v28  ;;  %v1643_v28 = vld [vmem:[%s2524_s7] ss:$0 sm:$0xff] }
 0x414   :  { %1544 = vmatmul.msk.f32.vlgmr.msra.gmra.mxu3 %vm226_vm5, %v198_v27 }
 0x418   :  { %v430_v29 = vpop.permute.xlu2 %429 }
 0x41e   :  { %v286_v31 = vpop.f32.mrf.mxu3 }
 0x41f   :  { %289 = vst.msk [vmem:[#allocation2] sm:$0xff] %vm226_vm5, %v286_v31 }
 0x420   :  { %v333_v33 = vpop.permute.xlu2 %332 }
 0x421   :  { %353 = vmatpush.msrb.mxu2 %v333_v33 }
 0x423   :  { %423 = vmatpush.msra.mxu2 %v221_v32 }
 0x428   :  { %v432_v34 = vpop.permute.xlu0 %431  ;;  %v315_v35 = vpop.f32.mrf.mxu3 }
 0x429   :  { %v318_v36 = vmul.f32 0.17677669, %v315_v35  ;;  %1546 = vmatpush.xpose.msk.msrb.mxu3 %vm226_vm5, %v432_v34 }
 0x42b   :  { %v319_v37 = vadd.f32 %v318_v36, %v1994_v58 }
 0x42c   :  { %1547 = vmatmul.msk.f32.vlgmr.msrb.gmra.mxu3 %vm226_vm5, %v430_v29 }
 0x42d   :  { %v320_v38 = vsel %vm254_vm6, %v319_v37, -inf  ;;  %530 = vmatpush.msra.mxu3 %v511_v7  ;;  %v677_v7 = vld [vmem:[%s2529_s12 + $0x78] sm:$0xff] }
 0x42e   :  { %321 = vmax.xlane.f32.xlu1 %v320_v38 }
 0x42f   :  { %531 = vmatpush.msra.mxu3 %v510_v14 }
 0x431   :  { %532 = vmatpush.msra.mxu3 %v509_v15 }
 0x433   :  { %533 = vmatpush.msra.mxu3 %v508_v16  ;;  %v671_v16 = vld [vmem:[%s2529_s12 + $0x48] sm:$0xff] }
 0x435   :  { %534 = vmatpush.msra.mxu3 %v507_v17 }
 0x437   :  { %535 = vmatpush.msra.mxu3 %v506_v18  ;;  %v670_v18 = vld [vmem:[%s2529_s12 + $0x40] sm:$0xff] }
 0x439   :  { %536 = vmatpush.msra.mxu3 %v505_v19  ;;  %v669_v19 = vld [vmem:[%s2529_s12 + $0x38] sm:$0xff] }
 0x43b   :  { %537 = vmatpush.msra.mxu3 %v504_v20  ;;  %v668_v20 = vld [vmem:[%s2529_s12 + $0x30] sm:$0xff] }
 0x43d   :  { %682 = vmatpush.msrb.mxu3 %v677_v7 }
 0x497   :  { %v388_v40 = vpop.f32.mrf.mxu3 }
 0x498   :  { %v391_v41 = vmul.f32 0.17677669, %v388_v40 }
 0x49a   :  { %v393_v42 = vadd.f32 %v2031_v39, %v391_v41 }
 0x49c   :  { %v394_v43 = vsel %vm254_vm6, %v393_v42, -inf }
 0x49d   :  { %395 = vmax.xlane.f32.xlu1 %v394_v43  ;;  %v609_v43 = vld [vmem:[%s2527_s10 + $0x30] sm:$0xff] }
 0x4a1   :  { %v322_v45 = vpop.xlane.xlu1 %321 }
 0x4a2   :  { %v323_v46 = vsub.f32 %v319_v37, %v322_v45  ;;  %v608_v45 = vld [vmem:[%s2527_s10 + $0x28] sm:$0xff] }
 0x4a4   :  { %v324_v47 = vmul.f32 1.442695, %v323_v46  ;;  %v606_v46 = vld [vmem:[%s2527_s10 + $0x18] sm:$0xff] }
 0x4a6   :  { %1667 = vpow2.f32 %v324_v47  ;;  %v605_v47 = vld [vmem:[%s2527_s10 + $0x10] sm:$0xff] }
 0x4ac   :  { %v1668_v48 = vpop.eup %1667 }
 0x4ad   :  { %v326_v49 = vsel %vm254_vm6, %v1668_v48, 0.0 }
 0x4ae   :  { %327 = vadd.xlane.f32.xlu0 %v326_v49  ;;  %v603_v49 = vld [vmem:[%s2527_s10] sm:$0xff] }
 0x4af   :  { %v454_v50 = vpop.f32.mrf.mxu3 }
 0x4b0   :  { %v457_v51 = vmul.f32 0.17677669, %v454_v50 }
 0x4b2   :  { %v458_v52 = vadd.f32 %v457_v51, %v2031_v39 }
 0x4b4   :  { %v459_v53 = vsel %vm254_vm6, %v458_v52, -inf }
 0x4b5   :  { %460 = vmax.xlane.f32.xlu2 %v459_v53 }
 0x510   :  { %v396_v54 = vpop.xlane.xlu1 %395 }
 0x511   :  { %v397_v55 = vsub.f32 %v393_v42, %v396_v54 }
 0x513   :  { %v398_v56 = vmul.f32 1.442695, %v397_v55 }
 0x515   :  { %1669 = vpow2.f32 %v398_v56 }
 0x51b   :  { %v1670_v57 = vpop.eup %1669 }
 0x51c   :  { %v400_v59 = vsel %vm254_vm6, %v1670_v57, 0.0 }
 0x51d   :  { %401 = vadd.xlane.f32.xlu1 %v400_v59 }
 0x521   :  { %v328_v60 = vpop.xlane.xlu0 %327 }
 0x522   :  { %1671 = vrcp.f32 %v328_v60 }
 0x528   :  { %v1672_v61 = vpop.eup %1671  ;;  %v461_v62 = vpop.xlane.xlu2 %460 }
 0x529   :  { %v462_v63 = vsub.f32 %v458_v52, %v461_v62  ;;  %v330_v0 = vmul.f32 %v1672_v61, %v1668_v48  ;;  %v604_v48 = vld [vmem:[%s2527_s10 + $0x8] sm:$0xff] }
 0x52b   :  { %v463_v1 = vmul.f32 1.442695, %v462_v63  ;;  %1542 = vmatmul.msk.f32.vlgmr.msrb.gmra.mxu2 %vm254_vm6, %v330_v0 }
 0x52d   :  { %1673 = vpow2.f32 %v463_v1  ;;  %v1644_v1 = vld [vmem:[%s2525_s8] ss:$0 sm:$0xff] }
 0x533   :  { %v1674_v2 = vpop.eup %1673 }
 0x534   :  { %v465_v3 = vsel %vm254_vm6, %v1674_v2, 0.0 }
 0x535   :  { %466 = vadd.xlane.f32.xlu1 %v465_v3 }
 0x54e   :  { %471 = vrot.lane.b32.xlu1 %v221_v32, %s1781_s21 }
 0x590   :  { %v402_v4 = vpop.xlane.xlu1 %401 }
 0x591   :  { %1675 = vrcp.f32 %v402_v4  ;;  %v1645_v4 = vld [vmem:[%s2526_s9] ss:$0 sm:$0xff] }
 0x597   :  { %v1676_v5 = vpop.eup %1675 }
 0x598   :  { %v404_v6 = vmul.f32 %v1676_v5, %v1670_v57 }
 0x59a   :  { %1545 = vmatmul.msk.f32.vlgmr.msra.gmra.mxu2 %vm254_vm6, %v404_v6 }
 0x5a8   :  { %v467_v10 = vpop.xlane.xlu1 %466 }
 0x5a9   :  { %1677 = vrcp.f32 %v467_v10  ;;  %v675_v10 = vld [vmem:[%s2529_s12 + $0x68] sm:$0xff] }
 0x5ae   :  { %v355_v9 = vpop.f32.mrf.mxu2 }
 0x5af   :  { %359 = vrot.lane.b32.xlu0 %v355_v9, %s1780_s28  ;;  %v1678_v11 = vpop.eup %1677  ;;  %v676_v9 = vld [vmem:[%s2529_s12 + $0x70] sm:$0xff] }
 0x5b0   :  { %v469_v12 = vmul.f32 %v1678_v11, %v1674_v2  ;;  %683 = vmatpush.msrb.mxu3 %v676_v9  ;;  %v674_v11 = vld [vmem:[%s2529_s12 + $0x60] sm:$0xff] }
 0x5b2   :  { %684 = vmatpush.msrb.mxu3 %v675_v10 }
 0x5b4   :  { %685 = vmatpush.msrb.mxu3 %v674_v11 }
 0x5c0   :  { %v472_v13 = vpop.permute.xlu1 %471 }
 0x5c1   :  { %492 = vmatpush.msrb.mxu2 %v472_v13  ;;  %v672_v13 = vld [vmem:[%s2529_s12 + $0x50] sm:$0xff] }
 0x5c2   :  { %1548 = vmatmul.msk.f32.vlgmr.msrb.gmra.mxu2 %vm254_vm6, %v469_v12  ;;  %v673_v12 = vld [vmem:[%s2529_s12 + $0x58] sm:$0xff] }
 0x5c3   :  { %686 = vmatpush.msrb.mxu3 %v673_v12 }
 0x5c5   :  { %687 = vmatpush.msrb.mxu3 %v672_v13 }
 0x5c7   :  { %688 = vmatpush.msrb.mxu3 %v671_v16  ;;  %v1566_v16 = vld [vmem:[%s2546_s29 + $0xe8] sm:$0xff] }
 0x5c9   :  { %689 = vmatpush.msrb.mxu3 %v670_v18  ;;  %v1564_v18 = vld [vmem:[%s2546_s29 + $0xd8] sm:$0xff] }
 0x5cb   :  { %690 = vmatpush.msrb.mxu3 %v669_v19  ;;  %v1561_v19 = vld [vmem:[%s2546_s29 + $0xc0] sm:$0xff] }
 0x5cd   :  { %691 = vmatpush.msrb.mxu3 %v668_v20  ;;  %v1562_v20 = vld [vmem:[%s2546_s29 + $0xc8] sm:$0xff] }
 0x61d   :  { %v425_v22 = vpop.f32.mrf.mxu2 }
 0x61e   :  { %428 = vst.msk [vmem:[#allocation2 + $0x8] sm:$0xff] %vm226_vm5, %v425_v22  ;;  %v667_v22 = vld [vmem:[%s2529_s12 + $0x28] sm:$0xff] }
 0x61f   :  { %692 = vmatpush.msrb.mxu3 %v667_v22  ;;  %v1559_v22 = vld [vmem:[%s2546_s29 + $0xb0] sm:$0xff] }
 0x621   :  { %v360_v23 = vpop.permute.xlu0 %359 }
 0x622   :  { %363 = vst.msk [vmem:[#allocation2] sm:$0xff] %vm362_vm10, %v360_v23  ;;  %v666_v23 = vld [vmem:[%s2529_s12 + $0x20] sm:$0xff] }
 0x623   :  { %693 = vmatpush.msrb.mxu3 %v666_v23  ;;  %v1560_v23 = vld [vmem:[%s2546_s29 + $0xb8] sm:$0xff] }
 0x629   :  { %v502_v24 = vld [vmem:[#allocation2] sm:$0xff] }
 0x62a   :  { %1549 = vmatmul.msk.f32.vlgmr.msra.gmra.mxu3 %vm87_vm0, %v502_v24 }
 0x645   :  { %v494_v25 = vpop.f32.mrf.mxu2 }
 0x646   :  { %498 = vrot.lane.b32.xlu2 %v494_v25, %s1780_s28  ;;  %v665_v25 = vld [vmem:[%s2529_s12 + $0x18] sm:$0xff] }
 0x647   :  { %694 = vmatpush.msrb.mxu3 %v665_v25  ;;  %v1558_v25 = vld [vmem:[%s2546_s29 + $0xa8] sm:$0xff] }
 0x6a0   :  { %v499_v26 = vpop.permute.xlu2 %498 }
 0x6a1   :  { %501 = vst.msk [vmem:[#allocation2 + $0x8] sm:$0xff] %vm362_vm10, %v499_v26 }
 0x6a8   :  { %v503_v27 = vld [vmem:[#allocation2 + $0x8] sm:$0xff] }
 0x6a9   :  { %1550 = vmatmul.msk.f32.gmra.mxu3 %vm87_vm0, %v503_v27  ;;  %v664_v27 = vld [vmem:[%s2529_s12 + $0x10] sm:$0xff] }
 0x6aa   :  { %695 = vmatpush.msrb.mxu3 %v664_v27  ;;  %v1556_v27 = vld [vmem:[%s2546_s29 + $0x98] sm:$0xff] }
 0x6ad   :  { %v539_v29 = vpop.f32.mrf.mxu3 }
 0x6ae   :  { %v540_v30 = vadd.f32 %v1643_v28, %v539_v29  ;;  %v663_v29 = vld [vmem:[%s2529_s12 + $0x8] sm:$0xff] }
 0x6af   :  { %696 = vmatpush.msrb.mxu3 %v663_v29  ;;  %v1554_v29 = vld [vmem:[%s2546_s29 + $0x88] sm:$0xff] }
 0x6b0   :  { %v545_v31 = vadd.f32 %v540_v30, %v1960_v44  ;;  %v610_v44 = vld [vmem:[%s2527_s10 + $0x38] sm:$0xff] }
 0x6b1   :  { %629 = vmatpush.msrb.mxu1 %v610_v44 }
 0x6b2   :  { %v549_v32 = vsel %vm87_vm0, %v545_v31, 0.0 }
 0x6b3   :  { %550 = vadd.xlane.f32.xlu1 %v549_v32  ;;  %630 = vmatpush.msrb.mxu1 %v609_v43 }
 0x6b5   :  { %631 = vmatpush.msrb.mxu1 %v608_v45 }
 0x726   :  { %v551_v33 = vpop.xlane.xlu1 %550 }
 0x727   :  { %v555_v34 = vmul.f32 %v551_v33, %v1895_v8 }
 0x729   :  { %v557_v35 = vsub.f32 %v545_v31, %v555_v34  ;;  %v662_v31 = vld [vmem:[%s2529_s12] sm:$0xff] }
 0x72a   :  { %697 = vmatpush.msrb.mxu3 %v662_v31 }
 0x72b   :  { %v559_v36 = vmul.f32 %v557_v35, %v557_v35 }
 0x72c   :  { %v542_v37 = vpop.f32.mrf.mxu3 }
 0x72d   :  { %v543_v38 = vadd.f32 %v1643_v28, %v542_v37  ;;  %v561_v40 = vsel %vm87_vm0, %v559_v36, 0.0  ;;  %v1646_v36 = vld [vmem:[%s2528_s11] ss:$0 sm:$0xff] }
 0x72e   :  { %562 = vadd.xlane.f32.xlu0 %v561_v40 }
 0x72f   :  { %v546_v41 = vadd.f32 %v543_v38, %v2006_v21  ;;  %v607_v21 = vld [vmem:[%s2527_s10 + $0x20] sm:$0xff] }
 0x730   :  { %632 = vmatpush.msrb.mxu1 %v607_v21 }
 0x731   :  { %v552_v42 = vsel %vm87_vm0, %v546_v41, 0.0 }
 0x732   :  { %553 = vadd.xlane.f32.xlu2 %v552_v42  ;;  %633 = vmatpush.msrb.mxu1 %v606_v46 }
 0x734   :  { %634 = vmatpush.msrb.mxu1 %v605_v47 }
 0x736   :  { %635 = vmatpush.msrb.mxu1 %v604_v48 }
 0x738   :  { %636 = vmatpush.msrb.mxu1 %v603_v49 }
 0x7a1   :  { %v563_v50 = vpop.xlane.xlu0 %562 }
 0x7a2   :  { %v567_v51 = vmul.f32 %v563_v50, %v1895_v8 }
 0x7a4   :  { %v569_v52 = vadd.f32 1e-12, %v567_v51 }
 0x7a5   :  { %v554_v53 = vpop.xlane.xlu2 %553 }
 0x7a6   :  { %1679 = vrsqrt.f32 %v569_v52  ;;  %v556_v54 = vmul.f32 %v554_v53, %v1895_v8  ;;  %vm577_vm12 = vweird.f32 %v569_v52 }
 0x7a8   :  { %v2110_v55 = vsub.f32 %v546_v41, %v556_v54 }
 0x7aa   :  { %v560_v56 = vmul.f32 %v2110_v55, %v2110_v55 }
 0x7ac   :  { %v1680_v57 = vpop.eup %1679  ;;  %v564_v59 = vsel %vm87_vm0, %v560_v56, 0.0 }
 0x7ad   :  { %v572_v60 = vmul.f32 %v1680_v57, %v569_v52  ;;  %565 = vadd.xlane.f32.xlu1 %v564_v59  ;;  %vm578_vm11 = vweird.f32 %v1680_v57 }
 0x7ae   :  { %vm579_vm13 = vmor %vm577_vm12, %vm578_vm11 }
 0x7af   :  { %v573_v61 = vmul.f32 %v1680_v57, %v572_v60 }
 0x7b1   :  { %v574_v62 = vmul.f32 0.5, %v573_v61 }
 0x7b3   :  { %v575_v63 = vsub.f32 1.5, %v574_v62  ;;  %v1647_v62 = vld [vmem:[%s2530_s13] ss:$0 sm:$0xff] }
 0x7b5   :  { %v576_v0 = vmul.f32 %v1680_v57, %v575_v63 }
 0x7b7   :  { %v580_v2 = vsel %vm579_vm13, %v1680_v57, %v576_v0 }
 0x7b8   :  { %v591_v3 = vmul.f32 %v580_v2, %v557_v35 }
 0x7ba   :  { %v596_v5 = vmul.f32 %v1644_v1, %v591_v3 }
 0x7bc   :  { %v2121_v6 = vadd.f32 %v1645_v4, %v596_v5 }
 0x7be   :  { %1551 = vmatmul.msk.f32.vlgmr.msrb.gmra.mxu1 %vm87_vm0, %v2121_v6 }
 0x820   :  { %v566_v14 = vpop.xlane.xlu1 %565 }
 0x821   :  { %v568_v15 = vmul.f32 %v566_v14, %v1895_v8  ;;  %v1568_v14 = vld [vmem:[%s2546_s29 + $0xf8] sm:$0xff] }
 0x822   :  { %824 = vmatpush.msrb.mxu0 %v1568_v14 }
 0x823   :  { %v570_v17 = vadd.f32 1e-12, %v568_v15  ;;  %v1565_v15 = vld [vmem:[%s2546_s29 + $0xe0] sm:$0xff] }
 0x824   :  { %825 = vmatpush.msrb.mxu0 %v1566_v16 }
 0x825   :  { %1681 = vrsqrt.f32 %v570_v17  ;;  %vm587_vm15 = vweird.f32 %v570_v17 }
 0x826   :  { %826 = vmatpush.msrb.mxu0 %v1564_v18 }
 0x828   :  { %827 = vmatpush.msrb.mxu0 %v1562_v20 }
 0x82a   :  { %828 = vmatpush.msrb.mxu0 %v1560_v23 }
 0x82b   :  { %v1682_v24 = vpop.eup %1681 }
 0x82c   :  { %v582_v26 = vmul.f32 %v1682_v24, %v570_v17  ;;  %vm588_vm14 = vweird.f32 %v1682_v24  ;;  %v1563_v17 = vld [vmem:[%s2546_s29 + $0xd0] sm:$0xff]  ;;  %829 = vmatpush.msrb.mxu0 %v1558_v25 }
 0x82d   :  { %vm589_vm1 = vmor %vm587_vm15, %vm588_vm14 }
 0x82e   :  { %v583_v28 = vmul.f32 %v1682_v24, %v582_v26  ;;  %v1555_v26 = vld [vmem:[%s2546_s29 + $0x90] sm:$0xff]  ;;  %830 = vmatpush.msrb.mxu0 %v1556_v27 }
 0x830   :  { %v584_v30 = vmul.f32 0.5, %v583_v28  ;;  %v1553_v28 = vld [vmem:[%s2546_s29 + $0x80] sm:$0xff]  ;;  %831 = vmatpush.msrb.mxu0 %v1554_v29 }
 0x832   :  { %v585_v32 = vsub.f32 1.5, %v584_v30 }
 0x834   :  { %v586_v33 = vmul.f32 %v1682_v24, %v585_v32 }
 0x836   :  { %v590_v34 = vsel %vm589_vm1, %v1682_v24, %v586_v33  ;;  %v1557_v24 = vld [vmem:[%s2546_s29 + $0xa0] sm:$0xff] }
 0x837   :  { %v592_v35 = vmul.f32 %v590_v34, %v2110_v55 }
 0x839   :  { %v597_v37 = vmul.f32 %v1644_v1, %v592_v35 }
 0x83b   :  { %v638_v38 = vpop.f32.mrf.mxu1  ;;  %v602_v40 = vadd.f32 %v1645_v4, %v597_v37 }
 0x83c   :  { %v639_v41 = vadd.f32 %v1646_v36, %v638_v38 }
 0x83d   :  { %1552 = vmatmul.msk.f32.gmra.mxu1 %vm87_vm0, %v602_v40 }
 0x83e   :  { %v644_v42 = vmul.f32 %v639_v41, %v639_v41 }
 0x840   :  { %v646_v44 = vmul.f32 %v644_v42, %v639_v41 }
 0x842   :  { %v648_v43 = vmul.f32 0.044715, %v646_v44 }
 0x844   :  { %v650_v45 = vadd.f32 %v648_v43, %v639_v41 }
 0x846   :  { %v652_v21 = vmul.f32 0.7978846, %v650_v45  ;;  %v1648_v45 = vld [vmem:[%s2531_s14] ss:$0 sm:$0xff] }
 0x848   :  { %1683 = vtanh.f32 %v652_v21 }
 0x84e   :  { %v1684_v46 = vpop.eup %1683 }
 0x84f   :  { %v656_v47 = vadd.f32 1.0, %v1684_v46 }
 0x851   :  { %v658_v48 = vmul.f32 0.5, %v656_v47  ;;  %v1649_v47 = vld [vmem:[%s2532_s15] ss:$0 sm:$0xff] }
 0x853   :  { %v660_v49 = vmul.f32 %v658_v48, %v639_v41 }
 0x855   :  { %698 = vmatmul.f32.vlgmr.msrb.gmra.mxu3 %v660_v49 }
 0x8ba   :  { %v641_v50 = vpop.f32.mrf.mxu1 }
 0x8bb   :  { %v642_v51 = vadd.f32 %v1646_v36, %v641_v50 }
 0x8bd   :  { %v645_v52 = vmul.f32 %v642_v51, %v642_v51 }
 0x8bf   :  { %v647_v53 = vmul.f32 %v645_v52, %v642_v51 }
 0x8c1   :  { %v649_v54 = vmul.f32 0.044715, %v647_v53 }
 0x8c3   :  { %v651_v55 = vadd.f32 %v649_v54, %v642_v51 }
 0x8c5   :  { %v653_v56 = vmul.f32 0.7978846, %v651_v55 }
 0x8c7   :  { %1685 = vtanh.f32 %v653_v56 }
 0x8cd   :  { %v1686_v57 = vpop.eup %1685 }
 0x8ce   :  { %v657_v59 = vadd.f32 1.0, %v1686_v57 }
 0x8d0   :  { %v659_v60 = vmul.f32 0.5, %v657_v59 }
 0x8d2   :  { %v661_v61 = vmul.f32 %v659_v60, %v642_v51 }
 0x8d4   :  { %701 = vmatmul.f32.gmra.mxu3 %v661_v61 }
 0x8d8   :  { %v699_v63 = vpop.f32.mrf.mxu3 }
 0x8d9   :  { %v700_v0 = vadd.f32 %v1647_v62, %v699_v63 }
 0x8db   :  { %v705_v1 = vadd.f32 %v700_v0, %v2121_v6  ;;  %v1567_v6 = vld [vmem:[%s2546_s29 + $0xf0] sm:$0xff]  ;;  %v1569_v0 = vld [vmem:[%s2522_s5 + $0x2] sm:$0x3] }
 0x8dc   :  { %801 = vmatpush.msra.mxu2 %v1567_v6 }
 0x8dd   :  { %v709_v2 = vsel %vm87_vm0, %v705_v1, 0.0 }
 0x8de   :  { %710 = vadd.xlane.f32.xlu0 %v709_v2  ;;  %802 = vmatpush.msra.mxu2 %v1565_v15 }
 0x8e0   :  { %803 = vmatpush.msra.mxu2 %v1563_v17 }
 0x8e2   :  { %804 = vmatpush.msra.mxu2 %v1561_v19 }
 0x8e4   :  { %805 = vmatpush.msra.mxu2 %v1559_v22 }
 0x8e6   :  { %806 = vmatpush.msra.mxu2 %v1557_v24 }
 0x8e8   :  { %807 = vmatpush.msra.mxu2 %v1555_v26 }
 0x8ea   :  { %808 = vmatpush.msra.mxu2 %v1553_v28 }
 0x951   :  { %v711_v3 = vpop.xlane.xlu0 %710 }
 0x952   :  { %v715_v4 = vmul.f32 %v711_v3, %v1895_v8 }
 0x954   :  { %v2185_v5 = vsub.f32 %v705_v1, %v715_v4  ;;  %v783_v1 = vperm.slane %v1569_v0, 0 }
 0x956   :  { %v719_v7 = vmul.f32 %v2185_v5, %v2185_v5 }
 0x957   :  { %v702_v9 = vpop.f32.mrf.mxu3 }
 0x958   :  { %v703_v10 = vadd.f32 %v1647_v62, %v702_v9  ;;  %v721_v11 = vsel %vm87_vm0, %v719_v7, 0.0 }
 0x959   :  { %722 = vadd.xlane.f32.xlu1 %v721_v11 }
 0x95a   :  { %v706_v12 = vadd.f32 %v703_v10, %v602_v40 }
 0x95c   :  { %v712_v13 = vsel %vm87_vm0, %v706_v12, 0.0 }
 0x95d   :  { %713 = vadd.xlane.f32.xlu0 %v712_v13 }
 0x9cc   :  { %v723_v30 = vpop.xlane.xlu1 %722 }
 0x9cd   :  { %v727_v31 = vmul.f32 %v723_v30, %v1895_v8 }
 0x9cf   :  { %v729_v32 = vadd.f32 1e-12, %v727_v31 }
 0x9d0   :  { %v714_v33 = vpop.xlane.xlu0 %713 }
 0x9d1   :  { %1687 = vrsqrt.f32 %v729_v32  ;;  %v716_v34 = vmul.f32 %v714_v33, %v1895_v8  ;;  %vm737_vm3 = vweird.f32 %v729_v32 }
 0x9d3   :  { %v718_v35 = vsub.f32 %v706_v12, %v716_v34 }
 0x9d5   :  { %v720_v36 = vmul.f32 %v718_v35, %v718_v35 }
 0x9d7   :  { %v1688_v37 = vpop.eup %1687  ;;  %v724_v38 = vsel %vm87_vm0, %v720_v36, 0.0 }
 0x9d8   :  { %v732_v40 = vmul.f32 %v1688_v37, %v729_v32  ;;  %725 = vadd.xlane.f32.xlu1 %v724_v38  ;;  %vm738_vm2 = vweird.f32 %v1688_v37 }
 0x9d9   :  { %vm739_vm4 = vmor %vm737_vm3, %vm738_vm2 }
 0x9da   :  { %v733_v41 = vmul.f32 %v1688_v37, %v732_v40 }
 0x9dc   :  { %v734_v42 = vmul.f32 0.5, %v733_v41 }
 0x9de   :  { %v735_v44 = vsub.f32 1.5, %v734_v42 }
 0x9e0   :  { %v736_v43 = vmul.f32 %v1688_v37, %v735_v44 }
 0x9e2   :  { %v740_v21 = vsel %vm739_vm4, %v1688_v37, %v736_v43 }
 0x9e3   :  { %v751_v46 = vmul.f32 %v740_v21, %v2185_v5  ;;  %v784_v5 = vperm.slane %v1569_v0, 1 }
 0x9e5   :  { %v756_v48 = vmul.f32 %v1648_v45, %v751_v46 }
 0x9e7   :  { %v2249_v49 = vadd.f32 %v1649_v47, %v756_v48 }
 0x9e9   :  { %1570 = vmatmul.msk.f32.vlgmr.msra.gmra.mxu2 %vm87_vm0, %v2249_v49  ;;  %1572 = vmatmul.msk.f32.vlgmr.msrb.gmra.mxu0 %vm87_vm0, %v2249_v49 }
 0xa4b   :  { %v726_v50 = vpop.xlane.xlu1 %725 }
 0xa4c   :  { %v728_v51 = vmul.f32 %v726_v50, %v1895_v8 }
 0xa4e   :  { %v730_v52 = vadd.f32 1e-12, %v728_v51 }
 0xa50   :  { %1689 = vrsqrt.f32 %v730_v52  ;;  %vm747_vm8 = vweird.f32 %v730_v52 }
 0xa56   :  { %v1690_v53 = vpop.eup %1689 }
 0xa57   :  { %v742_v54 = vmul.f32 %v1690_v53, %v730_v52  ;;  %vm748_vm7 = vweird.f32 %v1690_v53 }
 0xa58   :  { %vm749_vm9 = vmor %vm747_vm8, %vm748_vm7 }
 0xa59   :  { %v743_v55 = vmul.f32 %v1690_v53, %v742_v54  ;;  %v1593_v54 = vld [vmem:[%s2523_s6 + $0x78] sm:$0xff] }
 0xa5a   :  { %1143 = vmatpush.msra.mxu3 %v1593_v54 }
 0xa5b   :  { %v744_v56 = vmul.f32 0.5, %v743_v55  ;;  %v1592_v55 = vld [vmem:[%s2523_s6 + $0x70] sm:$0xff] }
 0xa5c   :  { %1144 = vmatpush.msra.mxu3 %v1592_v55 }
 0xa5d   :  { %v745_v57 = vsub.f32 1.5, %v744_v56  ;;  %v1591_v56 = vld [vmem:[%s2523_s6 + $0x68] sm:$0xff] }
 0xa5e   :  { %1145 = vmatpush.msra.mxu3 %v1591_v56  ;;  %v1625_v56 = vld [vmem:[%s2529_s12 + $0xf8] sm:$0xff] }
 0xa5f   :  { %v746_v59 = vmul.f32 %v1690_v53, %v745_v57  ;;  %v1589_v57 = vld [vmem:[%s2523_s6 + $0x58] sm:$0xff] }
 0xa61   :  { %v750_v60 = vsel %vm749_vm9, %v1690_v53, %v746_v59  ;;  %v1588_v59 = vld [vmem:[%s2523_s6 + $0x50] sm:$0xff] }
 0xa62   :  { %v752_v61 = vmul.f32 %v750_v60, %v718_v35  ;;  %v1587_v60 = vld [vmem:[%s2523_s6 + $0x48] sm:$0xff] }
 0xa64   :  { %v757_v62 = vmul.f32 %v1648_v45, %v752_v61  ;;  %v1586_v61 = vld [vmem:[%s2523_s6 + $0x40] sm:$0xff] }
 0xa66   :  { %v2256_v63 = vadd.f32 %v1649_v47, %v757_v62  ;;  %v833_v7 = vpop.f32.mrf.mxu0 }
 0xa67   :  { %v834_v9 = vadd.f32 %v833_v7, %v784_v5 }
 0xa68   :  { %1571 = vmatmul.msk.f32.gmra.mxu2 %vm87_vm0, %v2256_v63  ;;  %1573 = vmatmul.msk.f32.gmra.mxu0 %vm87_vm0, %v2256_v63 }
 0xa6c   :  { %v810_v2 = vpop.f32.mrf.mxu2 }
 0xa6d   :  { %v811_v3 = vadd.f32 %v810_v2, %v783_v1 }
 0xa6f   :  { %840 = vrot.lane.b32.xlu1 %v811_v3, %s1779_s26  ;;  %903 = vrot.lane.b32.xlu0 %v811_v3, %s1781_s21 }
 0xa70   :  { %905 = vrot.lane.b32.xlu2 %v811_v3, %s1780_s28 }
 0xaca   :  { %v906_v4 = vpop.permute.xlu2 %905 }
 0xacb   :  { %1577 = vmatpush.xpose.msk.msrb.mxu2 %vm226_vm5, %v906_v4 }
 0xae1   :  { %v904_v10 = vpop.permute.xlu0 %903  ;;  %v841_v11 = vpop.permute.xlu1 %840 }
 0xae2   :  { %1574 = vmatpush.xpose.msk.msra.mxu1 %vm226_vm5, %v841_v11  ;;  %1578 = vmatmul.msk.f32.vlgmr.msrb.gmra.mxu2 %vm226_vm5, %v904_v10 }
 0xae5   :  { %v836_v12 = vpop.f32.mrf.mxu0  ;;  %1575 = vmatmul.msk.f32.vlgmr.msra.gmra.mxu1 %vm226_vm5, %v811_v3 }
 0xae6   :  { %897 = vmatpush.msrb.mxu1 %v834_v9  ;;  %v2272_v13 = vadd.f32 %v836_v12, %v784_v5 }
 0xae8   :  { %1034 = vmatpush.msra.mxu2 %v2272_v13 }
 0xaeb   :  { %v813_v6 = vpop.f32.mrf.mxu2 }
 0xaec   :  { %v814_v23 = vadd.f32 %v813_v6, %v783_v1 }
 0xb62   :  { %v863_v14 = vpop.f32.mrf.mxu1 }
 0xb63   :  { %v866_v15 = vmul.f32 0.17677669, %v863_v14 }
 0xb65   :  { %v928_v16 = vpop.f32.mrf.mxu2  ;;  %v867_v17 = vadd.f32 %v866_v15, %v1994_v58 }
 0xb66   :  { %v931_v18 = vmul.f32 0.17677669, %v928_v16 }
 0xb67   :  { %v868_v19 = vsel %vm254_vm6, %v867_v17, -inf }
 0xb68   :  { %869 = vmax.xlane.f32.xlu2 %v868_v19  ;;  %v932_v20 = vadd.f32 %v931_v18, %v1994_v58 }
 0xb6a   :  { %v933_v22 = vsel %vm254_vm6, %v932_v20, -inf }
 0xb6b   :  { %934 = vmax.xlane.f32.xlu0 %v933_v22 }
 0xb7f   :  { %945 = vrot.lane.b32.xlu0 %v834_v9, %s1781_s21 }
 0xb80   :  { %1042 = vrot.lane.b32.xlu2 %v814_v23, %s1780_s28 }
 0xb88   :  { %977 = vrot.lane.b32.xlu2 %v814_v23, %s1779_s26 }
 0xbdb   :  { %v870_v24 = vpop.xlane.xlu2 %869 }
 0xbdc   :  { %v871_v25 = vsub.f32 %v867_v17, %v870_v24  ;;  %v2331_v17 = vld [vmem:[%s2524_s7 + $0x1] ss:$0 sm:$0xff] }
 0xbde   :  { %v872_v26 = vmul.f32 1.442695, %v871_v25  ;;  %v935_v27 = vpop.xlane.xlu0 %934 }
 0xbdf   :  { %v936_v28 = vsub.f32 %v932_v20, %v935_v27 }
 0xbe0   :  { %1691 = vpow2.f32 %v872_v26 }
 0xbe1   :  { %v937_v29 = vmul.f32 1.442695, %v936_v28 }
 0xbe3   :  { %1693 = vpow2.f32 %v937_v29  ;;  %v1043_v30 = vpop.permute.xlu2 %1042 }
 0xbe6   :  { %v1692_v58 = vpop.eup %1691 }
 0xbe7   :  { %v874_v31 = vsel %vm254_vm6, %v1692_v58, 0.0 }
 0xbe8   :  { %875 = vadd.xlane.f32.xlu0 %v874_v31 }
 0xbe9   :  { %v1694_v32 = vpop.eup %1693 }
 0xbea   :  { %v939_v33 = vsel %vm254_vm6, %v1694_v32, 0.0 }
 0xbeb   :  { %940 = vadd.xlane.f32.xlu1 %v939_v33  ;;  %v978_v34 = vpop.permute.xlu2 %977  ;;  %v1605_v33 = vld [vmem:[%s2527_s10 + $0x70] sm:$0xff] }
 0xbec   :  { %1580 = vmatpush.xpose.msk.msra.mxu1 %vm226_vm5, %v978_v34  ;;  %v1604_v34 = vld [vmem:[%s2527_s10 + $0x68] sm:$0xff] }
 0xbf1   :  { %v946_v35 = vpop.permute.xlu0 %945 }
 0xbf2   :  { %966 = vmatpush.msra.mxu0 %v946_v35  ;;  %v1603_v35 = vld [vmem:[%s2527_s10 + $0x60] sm:$0xff] }
 0xbf4   :  { %1583 = vmatpush.xpose.msk.msrb.mxu0 %vm226_vm5, %v1043_v30 }
 0xc04   :  { %1040 = vrot.lane.b32.xlu1 %v814_v23, %s1781_s21 }
 0xc5b   :  { %v876_v36 = vpop.xlane.xlu0 %875 }
 0xc5c   :  { %1695 = vrcp.f32 %v876_v36  ;;  %v1602_v36 = vld [vmem:[%s2527_s10 + $0x58] sm:$0xff] }
 0xc5e   :  { %v941_v37 = vpop.xlane.xlu1 %940 }
 0xc5f   :  { %1697 = vrcp.f32 %v941_v37  ;;  %v1601_v37 = vld [vmem:[%s2527_s10 + $0x50] sm:$0xff] }
 0xc62   :  { %v1696_v38 = vpop.eup %1695 }
 0xc63   :  { %v878_v40 = vmul.f32 %v1696_v38, %v1692_v58  ;;  %v1600_v38 = vld [vmem:[%s2527_s10 + $0x48] sm:$0xff] }
 0xc65   :  { %v1698_v41 = vpop.eup %1697  ;;  %1576 = vmatmul.msk.f32.vlgmr.msrb.gmra.mxu1 %vm254_vm6, %v878_v40  ;;  %v1599_v40 = vld [vmem:[%s2527_s10 + $0x40] sm:$0xff] }
 0xc66   :  { %v943_v42 = vmul.f32 %v1698_v41, %v1694_v32  ;;  %v1606_v32 = vld [vmem:[%s2527_s10 + $0x78] sm:$0xff] }
 0xc67   :  { %1246 = vmatpush.msrb.mxu2 %v1606_v32 }
 0xc68   :  { %1579 = vmatmul.msk.f32.vlgmr.msra.gmra.mxu0 %vm254_vm6, %v943_v42 }
 0xc69   :  { %1247 = vmatpush.msrb.mxu2 %v1605_v33  ;;  %1301 = vmatpush.msra.mxu0 %v1625_v56 }
 0xc6b   :  { %1248 = vmatpush.msrb.mxu2 %v1604_v34 }
 0xc6d   :  { %1581 = vmatmul.msk.f32.vlgmr.msra.gmra.mxu1 %vm226_vm5, %v814_v23  ;;  %1249 = vmatpush.msrb.mxu2 %v1603_v35 }
 0xc6f   :  { %1250 = vmatpush.msrb.mxu2 %v1602_v36 }
 0xc71   :  { %1251 = vmatpush.msrb.mxu2 %v1601_v37 }
 0xc73   :  { %1252 = vmatpush.msrb.mxu2 %v1600_v38 }
 0xc75   :  { %1253 = vmatpush.msrb.mxu2 %v1599_v40 }
 0xc76   :  { %v1041_v44 = vpop.permute.xlu1 %1040 }
 0xc77   :  { %1584 = vmatmul.msk.f32.vlgmr.msrb.gmra.mxu0 %vm226_vm5, %v1041_v44 }
 0xce2   :  { %v899_v43 = vpop.f32.mrf.mxu1 }
 0xce3   :  { %902 = vst.msk [vmem:[#allocation2] sm:$0xff] %vm226_vm5, %v899_v43 }
 0xce5   :  { %v968_v46 = vpop.f32.mrf.mxu0 }
 0xcea   :  { %v1000_v45 = vpop.f32.mrf.mxu1 }
 0xceb   :  { %v1003_v21 = vmul.f32 0.17677669, %v1000_v45 }
 0xced   :  { %v1004_v47 = vadd.f32 %v1003_v21, %v2031_v39 }
 0xcef   :  { %v1005_v48 = vsel %vm254_vm6, %v1004_v47, -inf }
 0xcf0   :  { %1006 = vmax.xlane.f32.xlu2 %v1005_v48 }
 0xcf4   :  { %v1065_v50 = vpop.f32.mrf.mxu0 }
 0xcf5   :  { %v1068_v51 = vmul.f32 0.17677669, %v1065_v50  ;;  %v2371_v50 = vld [vmem:[%s2525_s8 + $0x1] ss:$0 sm:$0xff] }
 0xcf7   :  { %v1069_v52 = vadd.f32 %v1068_v51, %v2031_v39  ;;  %v1590_v39 = vld [vmem:[%s2523_s6 + $0x60] sm:$0xff] }
 0xcf8   :  { %1146 = vmatpush.msra.mxu3 %v1590_v39  ;;  %v1624_v39 = vld [vmem:[%s2529_s12 + $0xf0] sm:$0xff] }
 0xcf9   :  { %v1070_v53 = vsel %vm254_vm6, %v1069_v52, -inf  ;;  %1302 = vmatpush.msra.mxu0 %v1624_v39 }
 0xcfa   :  { %1071 = vmax.xlane.f32.xlu1 %v1070_v53  ;;  %1147 = vmatpush.msra.mxu3 %v1589_v57  ;;  %v2376_v53 = vld [vmem:[%s2526_s9 + $0x1] ss:$0 sm:$0xff]  ;;  %v1623_v57 = vld [vmem:[%s2529_s12 + $0xe8] sm:$0xff] }
 0xcfb   :  { %1303 = vmatpush.msra.mxu0 %v1623_v57 }
 0xcfc   :  { %1148 = vmatpush.msra.mxu3 %v1588_v59 }
 0xcfe   :  { %1149 = vmatpush.msra.mxu3 %v1587_v60 }
 0xd00   :  { %1150 = vmatpush.msra.mxu3 %v1586_v61 }
 0xd08   :  { %972 = vrot.lane.b32.xlu2 %v968_v46, %s1780_s28 }
 0xd63   :  { %v1007_v62 = vpop.xlane.xlu2 %1006 }
 0xd64   :  { %v1008_v0 = vsub.f32 %v1004_v47, %v1007_v62 }
 0xd66   :  { %v1009_v1 = vmul.f32 1.442695, %v1008_v0  ;;  %v1622_v0 = vld [vmem:[%s2529_s12 + $0xe0] sm:$0xff] }
 0xd67   :  { %1304 = vmatpush.msra.mxu0 %v1622_v0 }
 0xd68   :  { %1699 = vpow2.f32 %v1009_v1  ;;  %v1621_v1 = vld [vmem:[%s2529_s12 + $0xd8] sm:$0xff] }
 0xd69   :  { %1305 = vmatpush.msra.mxu0 %v1621_v1  ;;  %v1391_v1 = vld [vmem:[%s2533_s16 + $0x38] sm:$0xff] }
 0xd6b   :  { %v973_v2 = vpop.permute.xlu2 %972 }
 0xd6c   :  { %975 = vst.msk [vmem:[#allocation2] sm:$0xff] %vm362_vm10, %v973_v2  ;;  %v1620_v2 = vld [vmem:[%s2529_s12 + $0xd0] sm:$0xff] }
 0xd6d   :  { %v1072_v3 = vpop.xlane.xlu1 %1071  ;;  %1306 = vmatpush.msra.mxu0 %v1620_v2  ;;  %v1390_v2 = vld [vmem:[%s2533_s16 + $0x30] sm:$0xff] }
 0xd6e   :  { %v1700_v4 = vpop.eup %1699  ;;  %v1073_v5 = vsub.f32 %v1069_v52, %v1072_v3  ;;  %v1618_v3 = vld [vmem:[%s2529_s12 + $0xc0] sm:$0xff] }
 0xd6f   :  { %v1011_v7 = vsel %vm254_vm6, %v1700_v4, 0.0 }
 0xd70   :  { %v1074_v9 = vmul.f32 1.442695, %v1073_v5  ;;  %1012 = vadd.xlane.f32.xlu1 %v1011_v7  ;;  %v1616_v5 = vld [vmem:[%s2529_s12 + $0xb0] sm:$0xff]  ;;  %v1615_v7 = vld [vmem:[%s2529_s12 + $0xa8] sm:$0xff] }
 0xd72   :  { %1701 = vpow2.f32 %v1074_v9  ;;  %v1614_v9 = vld [vmem:[%s2529_s12 + $0xa0] sm:$0xff] }
 0xd73   :  { %v1113_v10 = vld [vmem:[#allocation2] sm:$0xff] }
 0xd74   :  { %1595 = vmatmul.msk.f32.vlgmr.msra.gmra.mxu3 %vm87_vm0, %v1113_v10  ;;  %v1613_v10 = vld [vmem:[%s2529_s12 + $0x98] sm:$0xff] }
 0xd78   :  { %v1702_v11 = vpop.eup %1701 }
 0xd79   :  { %v1076_v12 = vsel %vm254_vm6, %v1702_v11, 0.0 }
 0xd7a   :  { %1077 = vadd.xlane.f32.xlu0 %v1076_v12  ;;  %v1611_v12 = vld [vmem:[%s2529_s12 + $0x88] sm:$0xff] }
 0xd8e   :  { %1082 = vrot.lane.b32.xlu0 %v2272_v13, %s1781_s21 }
 0xde3   :  { %v1013_v6 = vpop.xlane.xlu1 %1012 }
 0xde4   :  { %1703 = vrcp.f32 %v1013_v6  ;;  %v1610_v6 = vld [vmem:[%s2529_s12 + $0x80] sm:$0xff] }
 0xdea   :  { %v1704_v14 = vpop.eup %1703 }
 0xdeb   :  { %v1015_v15 = vmul.f32 %v1704_v14, %v1700_v4  ;;  %v1617_v4 = vld [vmem:[%s2529_s12 + $0xb8] sm:$0xff]  ;;  %v1653_v14 = vld [vmem:[%s2528_s11 + $0x1] ss:$0 sm:$0xff] }
 0xded   :  { %1582 = vmatmul.msk.f32.vlgmr.msra.gmra.mxu2 %vm254_vm6, %v1015_v15  ;;  %v1078_v16 = vpop.xlane.xlu0 %1077 }
 0xdee   :  { %1705 = vrcp.f32 %v1078_v16  ;;  %1470 = vmatpush.msra.mxu2 %v1391_v1 }
 0xdf0   :  { %1471 = vmatpush.msra.mxu2 %v1390_v2 }
 0xdf4   :  { %v1706_v22 = vpop.eup %1705 }
 0xdf5   :  { %v1080_v23 = vmul.f32 %v1706_v22, %v1702_v11  ;;  %v1612_v11 = vld [vmem:[%s2529_s12 + $0x90] sm:$0xff] }
 0xdf7   :  { %v1152_v18 = vpop.f32.mrf.mxu3 }
 0xdf8   :  { %v1153_v19 = vadd.f32 %v2331_v17, %v1152_v18 }
 0xdfa   :  { %v1158_v20 = vadd.f32 %v1153_v19, %v2249_v49 }
 0xdfc   :  { %v1164_v13 = vsel %vm87_vm0, %v1158_v20, 0.0 }
 0xdfd   :  { %1165 = vadd.xlane.f32.xlu0 %v1164_v13 }
 0xe00   :  { %v1083_v24 = vpop.permute.xlu0 %1082 }
 0xe01   :  { %1103 = vmatpush.msrb.mxu1 %v1083_v24 }
 0xe02   :  { %1585 = vmatmul.msk.f32.vlgmr.msrb.gmra.mxu1 %vm254_vm6, %v1080_v23 }
 0xe03   :  { %1404 = vmatpush.msra.mxu1 %v1391_v1  ;;  %v1491_v1 = vld [vmem:[%s2536_s19] sm:$0x1] }
 0xe05   :  { %1405 = vmatpush.msra.mxu1 %v1390_v2 }
 0xe70   :  { %v1036_v25 = vpop.f32.mrf.mxu2  ;;  %v1166_v27 = vpop.xlane.xlu0 %1165 }
 0xe71   :  { %1039 = vst.msk [vmem:[#allocation2 + $0x8] sm:$0xff] %vm226_vm5, %v1036_v25  ;;  %v1170_v28 = vmul.f32 %v1166_v27, %v1895_v8 }
 0xe73   :  { %v1172_v29 = vsub.f32 %v1158_v20, %v1170_v28 }
 0xe75   :  { %v1174_v49 = vmul.f32 %v1172_v29, %v1172_v29 }
 0xe77   :  { %v1176_v30 = vsel %vm87_vm0, %v1174_v49, 0.0 }
 0xe7f   :  { %v1105_v26 = vpop.f32.mrf.mxu1 }
 0xe80   :  { %1109 = vrot.lane.b32.xlu1 %v1105_v26, %s1780_s28 }
 0xeaa   :  { %1177 = vadd.xlane.f32.xlu1 %v1176_v30  ;;  %v2440_v30 = vld [vmem:[%s2530_s13 + $0x1] ss:$0 sm:$0xff]  ;;  %s1782_s13 = smov [#allocation6]  }
 0xeab   :  { %s1521_s29 = sshll.u32 %s1782_s13, 4  ;;  %s1522_s29 = int_to_ptr.vmem [resolvable:$true] %s1521_s29 }
 0xef2   :  { %v1110_v58 = vpop.permute.xlu1 %1109 }
 0xef3   :  { %1112 = vst.msk [vmem:[#allocation2 + $0x8] sm:$0xff] %vm362_vm10, %v1110_v58 }
 0xefa   :  { %v1114_v31 = vld [vmem:[#allocation2 + $0x8] sm:$0xff] }
 0xefb   :  { %1596 = vmatmul.msk.f32.gmra.mxu3 %vm87_vm0, %v1114_v31 }
 0xf1d   :  { %v1178_v41 = vpop.xlane.xlu1 %1177 }
 0xf1e   :  { %v1182_v42 = vmul.f32 %v1178_v41, %v1895_v8 }
 0xf20   :  { %v1184_v44 = vadd.f32 1e-12, %v1182_v42 }
 0xf22   :  { %1707 = vrsqrt.f32 %v1184_v44  ;;  %vm1192_vm6 = vweird.f32 %v1184_v44 }
 0xf28   :  { %v1708_v43 = vpop.eup %1707 }
 0xf29   :  { %v1187_v45 = vmul.f32 %v1708_v43, %v1184_v44  ;;  %vm1193_vm5 = vweird.f32 %v1708_v43 }
 0xf2a   :  { %vm1194_vm10 = vmor %vm1192_vm6, %vm1193_vm5 }
 0xf2b   :  { %v1188_v21 = vmul.f32 %v1708_v43, %v1187_v45 }
 0xf2d   :  { %v1189_v46 = vmul.f32 0.5, %v1188_v21 }
 0xf2f   :  { %v1190_v47 = vsub.f32 1.5, %v1189_v46 }
 0xf31   :  { %v1191_v48 = vmul.f32 %v1708_v43, %v1190_v47 }
 0xf33   :  { %v1195_v51 = vsel %vm1194_vm10, %v1708_v43, %v1191_v48 }
 0xf34   :  { %v1206_v52 = vmul.f32 %v1195_v51, %v1172_v29 }
 0xf36   :  { %v1211_v54 = vmul.f32 %v2371_v50, %v1206_v52 }
 0xf38   :  { %v1216_v55 = vadd.f32 %v2376_v53, %v1211_v54 }
 0xf3a   :  { %1608 = vmatmul.msk.f32.vlgmr.msrb.gmra.mxu2 %vm87_vm0, %v1216_v55 }
 0xf7e   :  { %v1155_v59 = vpop.f32.mrf.mxu3 }
 0xf7f   :  { %v1156_v60 = vadd.f32 %v2331_v17, %v1155_v59 }
 0xf81   :  { %v1159_v61 = vadd.f32 %v1156_v60, %v2256_v63  ;;  %v1619_v63 = vld [vmem:[%s2529_s12 + $0xc8] sm:$0xff] }
 0xf82   :  { %1307 = vmatpush.msra.mxu0 %v1619_v63  ;;  %v1389_v63 = vld [vmem:[%s2533_s16 + $0x28] sm:$0xff] }
 0xf83   :  { %v1167_v62 = vsel %vm87_vm0, %v1159_v61, 0.0  ;;  %1406 = vmatpush.msra.mxu1 %v1389_v63  ;;  %1472 = vmatpush.msra.mxu2 %v1389_v63 }
 0xf84   :  { %1168 = vadd.xlane.f32.xlu2 %v1167_v62  ;;  %1308 = vmatpush.msra.mxu0 %v1618_v3  ;;  %v1388_v3 = vld [vmem:[%s2533_s16 + $0x20] sm:$0xff] }
 0xf85   :  { %1407 = vmatpush.msra.mxu1 %v1388_v3  ;;  %1473 = vmatpush.msra.mxu2 %v1388_v3 }
 0xf86   :  { %1309 = vmatpush.msra.mxu0 %v1617_v4  ;;  %v1387_v4 = vld [vmem:[%s2533_s16 + $0x18] sm:$0xff] }
 0xf87   :  { %1408 = vmatpush.msra.mxu1 %v1387_v4  ;;  %1474 = vmatpush.msra.mxu2 %v1387_v4 }
 0xf88   :  { %1310 = vmatpush.msra.mxu0 %v1616_v5  ;;  %v1386_v5 = vld [vmem:[%s2533_s16 + $0x10] sm:$0xff] }
 0xf89   :  { %1409 = vmatpush.msra.mxu1 %v1386_v5  ;;  %1475 = vmatpush.msra.mxu2 %v1386_v5 }
 0xf8a   :  { %1311 = vmatpush.msra.mxu0 %v1615_v7  ;;  %v1385_v7 = vld [vmem:[%s2533_s16 + $0x8] sm:$0xff] }
 0xf8b   :  { %1410 = vmatpush.msra.mxu1 %v1385_v7  ;;  %1476 = vmatpush.msra.mxu2 %v1385_v7 }
 0xf8c   :  { %1312 = vmatpush.msra.mxu0 %v1614_v9  ;;  %v1384_v9 = vld [vmem:[%s2533_s16] sm:$0xff] }
 0xf8d   :  { %1411 = vmatpush.msra.mxu1 %v1384_v9  ;;  %1477 = vmatpush.msra.mxu2 %v1384_v9 }
 0xf8e   :  { %1313 = vmatpush.msra.mxu0 %v1613_v10 }
 0xf90   :  { %1314 = vmatpush.msra.mxu0 %v1612_v11 }
 0xf92   :  { %1315 = vmatpush.msra.mxu0 %v1611_v12 }
 0xf94   :  { %1316 = vmatpush.msra.mxu0 %v1610_v6 }
 0xfbd   :  { %v1255_v15 = vpop.f32.mrf.mxu2 }
 0xfbe   :  { %v1256_v16 = vadd.f32 %v1653_v14, %v1255_v15 }
 0xfc0   :  { %v1261_v17 = vmul.f32 %v1256_v16, %v1256_v16 }
 0xfc2   :  { %v1263_v18 = vmul.f32 %v1261_v17, %v1256_v16 }
 0xfc4   :  { %v1265_v19 = vmul.f32 0.044715, %v1263_v18 }
 0xfc6   :  { %v1267_v20 = vadd.f32 %v1265_v19, %v1256_v16  ;;  %v2481_v19 = vld [vmem:[%s2531_s14 + $0x1] ss:$0 sm:$0xff] }
 0xfc8   :  { %v1269_v13 = vmul.f32 0.7978846, %v1267_v20 }
 0xfca   :  { %1709 = vtanh.f32 %v1269_v13 }
 0xfd0   :  { %v1710_v22 = vpop.eup %1709 }
 0xfd1   :  { %v1273_v23 = vadd.f32 1.0, %v1710_v22  ;;  %v2486_v22 = vld [vmem:[%s2532_s15 + $0x1] ss:$0 sm:$0xff] }
 0xfd3   :  { %v1275_v24 = vmul.f32 0.5, %v1273_v23 }
 0xfd5   :  { %v1277_v25 = vmul.f32 %v1275_v24, %v1256_v16 }
 0xfd7   :  { %1317 = vmatmul.f32.vlgmr.msra.gmra.mxu0 %v1277_v25  ;;  %v1424_v25 = vld [vmem:[#allocation3 + $0x38] sm:$0xff] }
 0xfd8   :  { %1437 = vmatpush.msrb.mxu0 %v1424_v25  ;;  %1503 = vmatpush.msrb.mxu1 %v1424_v25 }
 0xff7   :  { %v1169_v26 = vpop.xlane.xlu2 %1168 }
 0xff8   :  { %v1171_v27 = vmul.f32 %v1169_v26, %v1895_v8  ;;  %v1423_v26 = vld [vmem:[#allocation3 + $0x30] sm:$0xff] }
 0xff9   :  { %1438 = vmatpush.msrb.mxu0 %v1423_v26  ;;  %1504 = vmatpush.msrb.mxu1 %v1423_v26 }
 0xffa   :  { %v1173_v28 = vsub.f32 %v1159_v61, %v1171_v27  ;;  %v1422_v27 = vld [vmem:[#allocation3 + $0x28] sm:$0xff] }
 0xffb   :  { %1439 = vmatpush.msrb.mxu0 %v1422_v27  ;;  %1505 = vmatpush.msrb.mxu1 %v1422_v27 }
 0xffc   :  { %v1175_v29 = vmul.f32 %v1173_v28, %v1173_v28 }
 0xffe   :  { %v1179_v49 = vsel %vm87_vm0, %v1175_v29, 0.0 }
 0xfff   :  { %1180 = vadd.xlane.f32.xlu0 %v1179_v49 }
0x1054   :  { %v1318_v58 = vpop.f32.mrf.mxu0 }
0x1055   :  { %v1319_v31 = vadd.f32 %v2440_v30, %v1318_v58 }
0x1057   :  { %v1324_v32 = vadd.f32 %v1319_v31, %v1216_v55  ;;  %v1421_v31 = vld [vmem:[#allocation3 + $0x20] sm:$0xff] }
0x1058   :  { %1440 = vmatpush.msrb.mxu0 %v1421_v31  ;;  %1506 = vmatpush.msrb.mxu1 %v1421_v31 }
0x1059   :  { %v1330_v33 = vsel %vm87_vm0, %v1324_v32, 0.0 }
0x105a   :  { %1331 = vadd.xlane.f32.xlu0 %v1330_v33  ;;  %v1419_v33 = vld [vmem:[#allocation3 + $0x10] sm:$0xff] }
0x1072   :  { %v1181_v34 = vpop.xlane.xlu0 %1180 }
0x1073   :  { %v1183_v35 = vmul.f32 %v1181_v34, %v1895_v8  ;;  %v1418_v34 = vld [vmem:[#allocation3 + $0x8] sm:$0xff] }
0x1075   :  { %v1185_v36 = vadd.f32 1e-12, %v1183_v35  ;;  %v1417_v35 = vld [vmem:[#allocation3] sm:$0xff] }
0x1077   :  { %1711 = vrsqrt.f32 %v1185_v36  ;;  %vm1202_vm12 = vweird.f32 %v1185_v36 }
0x107d   :  { %v1712_v37 = vpop.eup %1711 }
0x107e   :  { %v1197_v38 = vmul.f32 %v1712_v37, %v1185_v36  ;;  %vm1203_vm11 = vweird.f32 %v1712_v37 }
0x107f   :  { %vm1204_vm13 = vmor %vm1202_vm12, %vm1203_vm11 }
0x1080   :  { %v1198_v40 = vmul.f32 %v1712_v37, %v1197_v38 }
0x1082   :  { %v1199_v41 = vmul.f32 0.5, %v1198_v40 }
0x1084   :  { %v1200_v42 = vsub.f32 1.5, %v1199_v41 }
0x1086   :  { %v1201_v44 = vmul.f32 %v1712_v37, %v1200_v42 }
0x1088   :  { %v1205_v43 = vsel %vm1204_vm13, %v1712_v37, %v1201_v44 }
0x1089   :  { %v1207_v45 = vmul.f32 %v1205_v43, %v1173_v28 }
0x108b   :  { %v1212_v21 = vmul.f32 %v2371_v50, %v1207_v45  ;;  %v1425_v45 = vld [vmem:[%s2536_s19] sm:$0x1] }
0x108d   :  { %v2447_v46 = vadd.f32 %v2376_v53, %v1212_v21 }
0x108f   :  { %1609 = vmatmul.msk.f32.gmra.mxu2 %vm87_vm0, %v2447_v46 }
0x10cd   :  { %v1332_v47 = vpop.xlane.xlu0 %1331 }
0x10ce   :  { %v1336_v48 = vmul.f32 %v1332_v47, %v1895_v8 }
0x10d0   :  { %v1338_v51 = vsub.f32 %v1324_v32, %v1336_v48  ;;  %v1420_v32 = vld [vmem:[#allocation3 + $0x18] sm:$0xff] }
0x10d1   :  { %1441 = vmatpush.msrb.mxu0 %v1420_v32  ;;  %1507 = vmatpush.msrb.mxu1 %v1420_v32 }
0x10d2   :  { %v1340_v52 = vmul.f32 %v1338_v51, %v1338_v51 }
0x10d3   :  { %1442 = vmatpush.msrb.mxu0 %v1419_v33  ;;  %1508 = vmatpush.msrb.mxu1 %v1419_v33 }
0x10d4   :  { %v1342_v54 = vsel %vm87_vm0, %v1340_v52, 0.0 }
0x10d5   :  { %1343 = vadd.xlane.f32.xlu0 %v1342_v54  ;;  %1443 = vmatpush.msrb.mxu0 %v1418_v34 }
0x10d6   :  { %1509 = vmatpush.msrb.mxu1 %v1418_v34 }
0x10d7   :  { %1444 = vmatpush.msrb.mxu0 %v1417_v35 }
0x10d8   :  { %1510 = vmatpush.msrb.mxu1 %v1417_v35 }
0x1112   :  { %v1258_v55 = vpop.f32.mrf.mxu2 }
0x1113   :  { %v1259_v56 = vadd.f32 %v1653_v14, %v1258_v55 }
0x1115   :  { %v1262_v39 = vmul.f32 %v1259_v56, %v1259_v56 }
0x1117   :  { %v1264_v57 = vmul.f32 %v1262_v39, %v1259_v56 }
0x1119   :  { %v1266_v59 = vmul.f32 0.044715, %v1264_v57 }
0x111b   :  { %v1268_v50 = vadd.f32 %v1266_v59, %v1259_v56 }
0x111d   :  { %v1270_v60 = vmul.f32 0.7978846, %v1268_v50 }
0x111f   :  { %1713 = vtanh.f32 %v1270_v60 }
0x1125   :  { %v1714_v53 = vpop.eup %1713 }
0x1126   :  { %v1274_v61 = vadd.f32 1.0, %v1714_v53 }
0x1128   :  { %v1276_v62 = vmul.f32 0.5, %v1274_v61 }
0x112a   :  { %v1278_v0 = vmul.f32 %v1276_v62, %v1259_v56 }
0x112c   :  { %1320 = vmatmul.f32.gmra.mxu0 %v1278_v0 }
0x1148   :  { %v1344_v10 = vpop.xlane.xlu0 %1343 }
0x1149   :  { %v1348_v11 = vmul.f32 %v1344_v10, %v1895_v8 }
0x114b   :  { %v1350_v12 = vadd.f32 1e-12, %v1348_v11 }
0x114d   :  { %1715 = vrsqrt.f32 %v1350_v12  ;;  %vm1358_vm15 = vweird.f32 %v1350_v12 }
0x1153   :  { %v1716_v6 = vpop.eup %1715 }
0x1154   :  { %v1353_v14 = vmul.f32 %v1716_v6, %v1350_v12  ;;  %vm1359_vm14 = vweird.f32 %v1716_v6 }
0x1155   :  { %vm1360_vm1 = vmor %vm1358_vm15, %vm1359_vm14 }
0x1156   :  { %v1354_v15 = vmul.f32 %v1716_v6, %v1353_v14 }
0x1158   :  { %v1355_v16 = vmul.f32 0.5, %v1354_v15 }
0x115a   :  { %v1356_v17 = vsub.f32 1.5, %v1355_v16 }
0x115c   :  { %v1357_v18 = vmul.f32 %v1716_v6, %v1356_v17 }
0x115e   :  { %v1361_v20 = vsel %vm1360_vm1, %v1716_v6, %v1357_v18 }
0x115f   :  { %v1372_v13 = vmul.f32 %v1361_v20, %v1338_v51 }
0x1161   :  { %v1377_v23 = vmul.f32 %v2481_v19, %v1372_v13 }
0x1163   :  { %v1382_v24 = vadd.f32 %v2486_v22, %v1377_v23 }
0x1165   :  { %1629 = vmatmul.msk.f32.vlgmr.msra.gmra.mxu1 %vm87_vm0, %v1382_v24 }
0x11a9   :  { %v1321_v28 = vpop.f32.mrf.mxu0 }
0x11aa   :  { %v1322_v29 = vadd.f32 %v2440_v30, %v1321_v28  ;;  %v1392_v30 = vld [vmem:[%s2534_s17] sm:$0x1] }
0x11ac   :  { %v1325_v49 = vadd.f32 %v1322_v29, %v2447_v46 }
0x11ae   :  { %v1333_v58 = vsel %vm87_vm0, %v1325_v49, 0.0 }
0x11af   :  { %1334 = vadd.xlane.f32.xlu2 %v1333_v58 }
0x11e2   :  { %v1413_v36 = vpop.f32.mrf.mxu1 }
0x11e3   :  { %v1414_v37 = vadd.f32 %v1413_v36, %v1392_v30 }
0x11e5   :  { %1717 = vtanh.f32 %v1414_v37 }
0x11eb   :  { %v1718_v38 = vpop.eup %1717 }
0x11ec   :  { %1630 = vmatmul.msk.f32.vlgmr.msrb.gmra.mxu0 %vm87_vm0, %v1718_v38 }
0x1222   :  { %v1335_v40 = vpop.xlane.xlu2 %1334 }
0x1223   :  { %v1337_v41 = vmul.f32 %v1335_v40, %v1895_v8 }
0x1225   :  { %v1339_v42 = vsub.f32 %v1325_v49, %v1337_v41 }
0x1227   :  { %v1341_v44 = vmul.f32 %v1339_v42, %v1339_v42 }
0x1229   :  { %v1345_v43 = vsel %vm87_vm0, %v1341_v44, 0.0 }
0x122a   :  { %1346 = vadd.xlane.f32.xlu2 %v1345_v43 }
0x1269   :  { %v1446_v21 = vpop.f32.mrf.mxu0 }
0x126a   :  { %v1447_v46 = vadd.f32 %v1446_v21, %v1425_v45 }
0x126c   :  { %1449 = vst [vmem:[#allocation6] sm:$0x1] %v1447_v46 }
0x129d   :  { %v1347_v47 = vpop.xlane.xlu2 %1346 }
0x129e   :  { %v1349_v48 = vmul.f32 %v1347_v47, %v1895_v8  ;;  %v1458_v8 = vld [vmem:[%s2534_s17] sm:$0x1] }
0x12a0   :  { %v1351_v51 = vadd.f32 1e-12, %v1349_v48 }
0x12a2   :  { %1719 = vrsqrt.f32 %v1351_v51  ;;  %vm1368_vm3 = vweird.f32 %v1351_v51 }
0x12a8   :  { %v1720_v52 = vpop.eup %1719 }
0x12a9   :  { %v1363_v54 = vmul.f32 %v1720_v52, %v1351_v51  ;;  %vm1369_vm2 = vweird.f32 %v1720_v52 }
0x12aa   :  { %vm1370_vm4 = vmor %vm1368_vm3, %vm1369_vm2 }
0x12ab   :  { %v1364_v55 = vmul.f32 %v1720_v52, %v1363_v54 }
0x12ad   :  { %v1365_v56 = vmul.f32 0.5, %v1364_v55 }
0x12af   :  { %v1366_v39 = vsub.f32 1.5, %v1365_v56 }
0x12b1   :  { %v1367_v57 = vmul.f32 %v1720_v52, %v1366_v39 }
0x12b3   :  { %v1371_v59 = vsel %vm1370_vm4, %v1720_v52, %v1367_v57 }
0x12b4   :  { %v1373_v50 = vmul.f32 %v1371_v59, %v1339_v42 }
0x12b6   :  { %v1378_v60 = vmul.f32 %v2481_v19, %v1373_v50 }
0x12b8   :  { %v1383_v53 = vadd.f32 %v2486_v22, %v1378_v60 }
0x12ba   :  { %1631 = vmatmul.msk.f32.vlgmr.msra.gmra.mxu2 %vm87_vm0, %v1383_v53 }
0x133d   :  { %v1479_v61 = vpop.f32.mrf.mxu2 }
0x133e   :  { %v1480_v62 = vadd.f32 %v1479_v61, %v1458_v8 }
0x1340   :  { %1721 = vtanh.f32 %v1480_v62 }
0x1346   :  { %v1722_v0 = vpop.eup %1721 }
0x1347   :  { %1632 = vmatmul.msk.f32.vlgmr.msrb.gmra.mxu1 %vm87_vm0, %v1722_v0 }
0x13c4   :  { %v1512_v2 = vpop.f32.mrf.mxu1 }
0x13c5   :  { %v1513_v63 = vadd.f32 %v1512_v2, %v1491_v1 }
0x13c7   :  { %1515 = vst [vmem:[#allocation6 + $0x1] sm:$0x1] %v1513_v63 }
0x13c8   :  { %1526 = dma.vmem_to_hbm [thread:$0]  %s1522_s29, 32, %s1524_s1, [#allocation5]  }
0x13c9   :  { %1773 = dma.done.wait [#allocation5], 32  }
0x13ca   :  { %1774 = vsyncadd [#allocation5], 4294967264 }
0x13cb   :  { %1531 = vsyncpa [#allocation4], 1 }
0x13cc   :  { %1532 = vsyncpa [#allocation5], 1 }

</bundles_post_ra>
